<compile_context>
chip_gen: v7x
topology: tpu7x:2x2x1
jax: 0.10.0
libtpu: 0.0.40
codegen_flags: <defaults>
</compile_context>

<pallas_src>
import functools

import jax
import jax.numpy as jnp
from jax import lax
from jax.experimental import pallas as pl
from jax.experimental.pallas import tpu as pltpu

LN_EPS = 1e-12
MXU_DTYPE = jnp.bfloat16          # MXU operand / residual-stream dtype; accum f32.


# ---------------------------------------------------------------------------
# VMEM limit (per TPU generation) and tile selection
# ---------------------------------------------------------------------------
@functools.lru_cache(maxsize=None)
def _vmem_limit_bytes():
    try:
        cap = pltpu.get_tpu_info().vmem_capacity_bytes
        # ~65% of physical VMEM, capped at 100 MiB:
        #   v5e/v6e (128 MiB) -> ~83 MiB, v7x (64 MiB/TC) -> ~41 MiB.
        return min(int(cap * 0.65), 100 * 1024 * 1024)
    except Exception:
        return 48 * 1024 * 1024


def _pick_tile(dim, target, aligns):
    """Largest divisor of `dim` <= target, preferring larger alignments (256-first
    so tiles fill the 256-wide MXU and stores stay lane-dense)."""
    if dim <= target:
        return dim
    for a in aligns:
        t = (target // a) * a
        while t >= a:
            if dim % t == 0:
                return t
            t -= a
    return dim


# ---------------------------------------------------------------------------
# Tiled linear kernels (K-reduction accumulator, fused epilogues)
# ---------------------------------------------------------------------------
def _linear_kernel(x_ref, w_ref, b_ref, o_ref, acc_ref, *, activation):
    k = pl.program_id(2)

    @pl.when(k == 0)
    def _():
        acc_ref[...] = jnp.zeros_like(acc_ref)

    acc_ref[...] += jnp.dot(
        x_ref[...].astype(MXU_DTYPE),
        w_ref[...].astype(MXU_DTYPE),
        preferred_element_type=jnp.float32,
    )

    @pl.when(k == pl.num_programs(2) - 1)
    def _():
        y = acc_ref[...] + b_ref[...]
        if activation == "gelu":
            # tanh-approx GELU (EUP tanh); error << bf16 activation noise.
            y = jax.nn.gelu(y, approximate=True)
        o_ref[...] = y.astype(o_ref.dtype)


def _linear_res_ln_kernel(x_ref, w_ref, b_ref, res_ref, g_ref, beta_ref,
                          o_ref, acc_ref, *, eps):
    k = pl.program_id(2)

    @pl.when(k == 0)
    def _():
        acc_ref[...] = jnp.zeros_like(acc_ref)

    acc_ref[...] += jnp.dot(
        x_ref[...].astype(MXU_DTYPE),
        w_ref[...].astype(MXU_DTYPE),
        preferred_element_type=jnp.float32,
    )

    @pl.when(k == pl.num_programs(2) - 1)
    def _():
        # BertSelfOutput / BertOutput: LayerNorm(dense(x) + residual), f32 stats.
        h = acc_ref[...] + b_ref[...] + res_ref[...].astype(jnp.float32)
        mu = jnp.mean(h, axis=-1, keepdims=True)
        var = jnp.mean(jnp.square(h - mu), axis=-1, keepdims=True)
        y = (h - mu) * lax.rsqrt(var + eps)
        o_ref[...] = (y * g_ref[...] + beta_ref[...]).astype(o_ref.dtype)


def linear(x, w, b, *, activation=None, residual=None, ln=None,
           out_dtype=None, tm_target=512, tn_target=1024, tk_target=512):
    """Tiled y = act(x @ w + b) with optional fused residual-add + LayerNorm.

    x: (M, K), w: (K, N), b: (N,). When `ln=(gamma, beta)` is given, `residual`
    (M, N) is added before the LayerNorm and the N axis is kept in one tile.
    """
    M, K = x.shape
    Kw, N = w.shape
    assert K == Kw
    out_dtype = out_dtype if out_dtype is not None else x.dtype
    fuse_ln = ln is not None
    if fuse_ln:
        assert residual is not None and residual.shape == (M, N)

    tm = _pick_tile(M, tm_target, (256, 128, 16, 8))
    tk = _pick_tile(K, tk_target, (256, 128))
    tn = N if fuse_ln else _pick_tile(N, tn_target, (256, 128))
    grid = (M // tm, N // tn, K // tk)

    x_spec = pl.BlockSpec((tm, tk), lambda i, j, k: (i, k))
    w_spec = pl.BlockSpec((tk, tn), lambda i, j, k: (k, j))
    b_spec = pl.BlockSpec((1, tn), lambda i, j, k: (0, j))
    o_spec = pl.BlockSpec((tm, tn), lambda i, j, k: (i, j))

    flops = 2 * M * N * K
    transcendentals = M * N if activation == "gelu" else 0
    bytes_accessed = int(
        x.size * x.dtype.itemsize + w.size * w.dtype.itemsize
        + N * 4 + M * N * jnp.dtype(out_dtype).itemsize
        + (residual.size * residual.dtype.itemsize if fuse_ln else 0)
    )

    common = dict(
        out_shape=jax.ShapeDtypeStruct((M, N), out_dtype),
        grid=grid,
        out_specs=o_spec,
        scratch_shapes=[pltpu.VMEM((tm, tn), jnp.float32)],
        compiler_params=pltpu.CompilerParams(
            dimension_semantics=("parallel", "parallel", "arbitrary"),
            vmem_limit_bytes=_vmem_limit_bytes(),
        ),
        cost_estimate=pl.CostEstimate(
            flops=int(flops), transcendentals=int(transcendentals),
            bytes_accessed=bytes_accessed),
    )

    if not fuse_ln:
        return pl.pallas_call(
            functools.partial(_linear_kernel, activation=activation),
            in_specs=[x_spec, w_spec, b_spec],
            **common,
        )(x, w, b.reshape(1, N))

    gamma, beta = ln
    r_spec = pl.BlockSpec((tm, tn), lambda i, j, k: (i, j))
    p_spec = pl.BlockSpec((1, tn), lambda i, j, k: (0, j))
    return pl.pallas_call(
        functools.partial(_linear_res_ln_kernel, eps=LN_EPS),
        in_specs=[x_spec, w_spec, b_spec, r_spec, p_spec, p_spec],
        **common,
    )(x, w, b.reshape(1, N), residual, gamma.reshape(1, N), beta.reshape(1, N))


# ---------------------------------------------------------------------------
# Position embedding add + LayerNorm (pos table resident, no jnp.tile)
# ---------------------------------------------------------------------------
def _embed_ln_kernel(x_ref, pos_ref, g_ref, b_ref, o_ref, *, eps):
    h = x_ref[0].astype(jnp.float32) + pos_ref[...]
    mu = jnp.mean(h, axis=-1, keepdims=True)
    var = jnp.mean(jnp.square(h - mu), axis=-1, keepdims=True)
    y = (h - mu) * lax.rsqrt(var + eps)
    o_ref[0] = (y * g_ref[...] + b_ref[...]).astype(o_ref.dtype)


def embed_layernorm(x, pos, gamma, beta):
    """x: (B, S, H); pos: (S, H) broadcast over batch; LayerNorm over H."""
    B, S, H = x.shape
    return pl.pallas_call(
        functools.partial(_embed_ln_kernel, eps=LN_EPS),
        out_shape=jax.ShapeDtypeStruct((B, S, H), x.dtype),
        grid=(B,),
        in_specs=[
            pl.BlockSpec((1, S, H), lambda b: (b, 0, 0)),
            pl.BlockSpec((S, H), lambda b: (0, 0)),      # same block -> stays in VMEM
            pl.BlockSpec((1, H), lambda b: (0, 0)),
            pl.BlockSpec((1, H), lambda b: (0, 0)),
        ],
        out_specs=pl.BlockSpec((1, S, H), lambda b: (b, 0, 0)),
        compiler_params=pltpu.CompilerParams(
            dimension_semantics=("parallel",),
            vmem_limit_bytes=_vmem_limit_bytes()),
    )(x, pos, gamma.reshape(1, H), beta.reshape(1, H))


# ---------------------------------------------------------------------------
# Multi-head self-attention on fused QKV (q-tiled grid, per-head writes)
# ---------------------------------------------------------------------------
def _mha_kernel(q_ref, kv_ref, o_ref, *, n_heads):
    H3 = kv_ref.shape[-1]
    H = H3 // 3
    Dh = H // n_heads
    q_rows = q_ref[0]                     # (tq, 3H) bf16 (only Q columns used)
    kv = kv_ref[0]                        # (S, 3H) bf16, resident across q-tiles
    for h in range(n_heads):              # static unroll; heads sliced in-register
        base = h * Dh
        qh = q_rows[:, base:base + Dh]                   # 1/sqrt(Dh) folded into Wq
        kh = kv[:, H + base:H + base + Dh]
        vh = kv[:, 2 * H + base:2 * H + base + Dh]
        # Contract Dh directly (no explicit bf16 K transpose).
        s = lax.dot_general(qh, kh, (((1,), (1,)), ((), ())),
                            preferred_element_type=jnp.float32)
        s = s - jnp.max(s, axis=-1, keepdims=True)
        p = jnp.exp(s)
        p = p * pl.reciprocal(jnp.sum(p, axis=-1, keepdims=True), approx=True)
        ctx = jnp.dot(p.astype(MXU_DTYPE), vh, preferred_element_type=jnp.float32)
        # Write each head's context directly (no concat -> no vreg blow-up).
        o_ref[0, :, base:base + Dh] = ctx.astype(o_ref.dtype)


def attention(qkv, n_heads, *, tq_target=256):
    """qkv: (B, S, 3H) fused projections -> per-head attention context (B, S, H)."""
    B, S, H3 = qkv.shape
    H = H3 // 3
    tq = _pick_tile(S, tq_target, (256, 128, 16, 8))
    grid = (B, S // tq)
    return pl.pallas_call(
        functools.partial(_mha_kernel, n_heads=n_heads),
        out_shape=jax.ShapeDtypeStruct((B, S, H), qkv.dtype),
        grid=grid,
        in_specs=[
            pl.BlockSpec((1, tq, H3), lambda b, qi: (b, qi, 0)),   # Q rows tile
            pl.BlockSpec((1, S, H3), lambda b, qi: (b, 0, 0)),     # full K/V, resident
        ],
        out_specs=pl.BlockSpec((1, tq, H), lambda b, qi: (b, qi, 0)),
        compiler_params=pltpu.CompilerParams(
            dimension_semantics=("parallel", "parallel"),
            vmem_limit_bytes=_vmem_limit_bytes()),
    )(qkv, qkv)


# ---------------------------------------------------------------------------
# Max over sequence dim
# ---------------------------------------------------------------------------
def _max_seq_kernel(x_ref, o_ref):
    o_ref[...] = jnp.max(x_ref[...], axis=1, keepdims=True).astype(o_ref.dtype)


def max_over_seq(x):
    """x: (B, S, H) -> (B, H), max over seq dim (torch.max(x, dim=1).values)."""
    B, S, H = x.shape
    out = pl.pallas_call(
        _max_seq_kernel,
        out_shape=jax.ShapeDtypeStruct((B, 1, H), x.dtype),
        grid=(B,),
        in_specs=[pl.BlockSpec((1, S, H), lambda b: (b, 0, 0))],
        out_specs=pl.BlockSpec((1, 1, H), lambda b: (b, 0, 0)),
        compiler_params=pltpu.CompilerParams(dimension_semantics=("parallel",)),
    )(x)
    return out.reshape(B, H)


# ---------------------------------------------------------------------------
# Parameters (deterministic synthetic init; dense weights stored bf16)
# ---------------------------------------------------------------------------
def _dense(key, din, dout):
    kw, kb = jax.random.split(key)
    w = (jax.random.normal(kw, (din, dout), jnp.float32) * 0.02).astype(MXU_DTYPE)
    b = jax.random.normal(kb, (dout,), jnp.float32) * 0.02
    return w, b


def _ln_params(hidden):
    return (jnp.ones((hidden,), jnp.float32), jnp.zeros((hidden,), jnp.float32))


def init_params(key, input_size, hidden, intermediate, n_layers, max_pos,
                n_classes, n_heads):
    keys = jax.random.split(key, 3 + n_layers)
    n_classes_padded = ((n_classes + 127) // 128) * 128   # lane-dense classifier
    params = {
        "l1": _dense(keys[0], input_size, hidden),
        "pos_emb": jax.random.normal(keys[1], (max_pos, hidden), jnp.float32) * 0.02,
        "emb_ln": _ln_params(hidden),
        "layers": [],
        "l2": _dense(keys[2], hidden, n_classes_padded),
    }
    head_dim = hidden // n_heads
    q_scale = 1.0 / (head_dim ** 0.5)
    for i in range(n_layers):
        lk = jax.random.split(keys[3 + i], 6)
        wq, bq = _dense(lk[0], hidden, hidden)
        wk, bk = _dense(lk[1], hidden, hidden)
        wv, bv = _dense(lk[2], hidden, hidden)
        # Fold attention 1/sqrt(Dh) scale into the Q projection (zero kernel cost).
        wq = (wq.astype(jnp.float32) * q_scale).astype(MXU_DTYPE)
        bq = bq * q_scale
        params["layers"].append({
            "qkv": (jnp.concatenate([wq, wk, wv], axis=1),     # (H, 3H) fused
                    jnp.concatenate([bq, bk, bv], axis=0)),    # (3H,)
            "attn_out": _dense(lk[3], hidden, hidden),
            "attn_ln": _ln_params(hidden),
            "inter": _dense(lk[4], hidden, intermediate),
            "out": _dense(lk[5], intermediate, hidden),
            "out_ln": _ln_params(hidden),
        })
    return params


# ---------------------------------------------------------------------------
# Forward pass
# ---------------------------------------------------------------------------
def transformer_forward(params, x, n_heads, n_classes):
    B, S, _ = x.shape
    H = params["l1"][0].shape[1]

    # l1: input projection -> bf16 residual stream (halves activation HBM traffic).
    h = linear(x.reshape(B * S, -1), *params["l1"], out_dtype=MXU_DTYPE)

    # PositionEmbedding: x + pos_emb, LayerNorm (dropout = identity).
    pos = params["pos_emb"][:S]                               # (S, H)
    h = embed_layernorm(h.reshape(B, S, H), pos, *params["emb_ln"])
    h = h.reshape(B * S, H)

    # BertLayer stack.
    for layer in params["layers"]:
        qkv = linear(h, *layer["qkv"], out_dtype=MXU_DTYPE)   # fused QKV (B*S, 3H)
        ctx = attention(qkv.reshape(B, S, 3 * H), n_heads)    # (B, S, H) bf16
        # attn output projection + residual + LayerNorm fused in one kernel.
        h = linear(ctx.reshape(B * S, H), *layer["attn_out"],
                   residual=h, ln=layer["attn_ln"], out_dtype=MXU_DTYPE)
        # FFN: intermediate (GELU fused), then output proj + residual + LN fused.
        inter = linear(h, *layer["inter"], activation="gelu", out_dtype=MXU_DTYPE)
        h = linear(inter, *layer["out"],
                   residual=h, ln=layer["out_ln"], out_dtype=MXU_DTYPE)

    # max over seq, dropout (identity), l2 classifier (padded to 128 lanes).
    pooled = max_over_seq(h.reshape(B, S, H))                 # (B, H)
    logits = linear(pooled, *params["l2"], out_dtype=jnp.float32)
    return logits[:, :n_classes]


# ---------------------------------------------------------------------------
if __name__ == "__main__":
    # Small config consistent with the module:
    B, S, INPUT_SIZE = 2, 8, 16
    HIDDEN, N_HEADS, INTERMEDIATE = 32, 4, 64
    N_LAYERS, MAX_POS, N_CLASSES = 2, 16, 50

    key = jax.random.PRNGKey(0)
    kx, kp = jax.random.split(key)
    x = jax.random.normal(kx, (B, S, INPUT_SIZE), jnp.float32)
    params = init_params(kp, INPUT_SIZE, HIDDEN, INTERMEDIATE, N_LAYERS,
                         MAX_POS, N_CLASSES, N_HEADS)

    fwd = jax.jit(transformer_forward, static_argnums=(2, 3))
    out = fwd(params, x, N_HEADS, N_CLASSES)
    out = jax.block_until_ready(out)
    assert out.shape == (B, N_CLASSES), out.shape
    assert bool(jnp.all(jnp.isfinite(out))), "non-finite logits"
    print("KERNEL_OK")
</pallas_src>

<mosaic_0001>
module attributes {stable_mosaic.version = 11 : i64} {
  func.func @_linear_kernel(%arg0: i32, %arg1: i32, %arg2: i32, %arg3: memref<16x32xbf16, #tpu.memory_space<vmem>>, %arg4: memref<32x96xbf16, #tpu.memory_space<vmem>>, %arg5: memref<1x96xf32, #tpu.memory_space<vmem>>, %arg6: memref<16x96xbf16, #tpu.memory_space<vmem>>, %arg7: memref<16x96xf32, #tpu.memory_space<vmem>>) attributes {dimension_semantics = [#tpu.dimension_semantics<parallel>, #tpu.dimension_semantics<parallel>, #tpu.dimension_semantics<arbitrary>], iteration_bounds = array<i64: 1, 1, 1>, scalar_prefetch = 0 : i64, scratch_operands = 1 : i64, tpu.core_type = #tpu.core_type<tc>, window_params = [{transform_indices = @transform_0, window_bounds = array<i64: 16, 32>}, {transform_indices = @transform_1, window_bounds = array<i64: 32, 96>}, {transform_indices = @transform_2, window_bounds = array<i64: 1, 96>}, {transform_indices = @transform_3, window_bounds = array<i64: 16, 96>}]} {
    %c0_i32 = arith.constant 0 : i32
    %0 = arith.cmpi eq, %arg2, %c0_i32 : i32
    %1 = arith.extui %0 : i1 to i32
    %c0_i32_0 = arith.constant 0 : i32
    %2 = arith.cmpi ne, %1, %c0_i32_0 : i32
    scf.if %2 {
      %cst_10 = arith.constant 0.000000e+00 : f32
      %12 = vector.broadcast %cst_10 : f32 to vector<16x96xf32>
      %c0_11 = arith.constant 0 : index
      %c0_12 = arith.constant 0 : index
      %13 = vector.load %arg7[%c0_11, %c0_12] : memref<16x96xf32, #tpu.memory_space<vmem>>, vector<16x96xf32>
      tpu.vector_store %arg7[%c0_11, %c0_12], %12 {strides = array<i32>} : memref<16x96xf32, #tpu.memory_space<vmem>>, vector<16x96xf32>,
    } else {
    }
    %c0 = arith.constant 0 : index
    %c0_1 = arith.constant 0 : index
    %3 = vector.load %arg7[%c0, %c0_1] : memref<16x96xf32, #tpu.memory_space<vmem>>, vector<16x96xf32>
    %c0_2 = arith.constant 0 : index
    %c0_3 = arith.constant 0 : index
    %4 = vector.load %arg3[%c0_2, %c0_3] : memref<16x32xbf16, #tpu.memory_space<vmem>>, vector<16x32xbf16>
    %c0_4 = arith.constant 0 : index
    %c0_5 = arith.constant 0 : index
    %5 = vector.load %arg4[%c0_4, %c0_5] : memref<32x96xbf16, #tpu.memory_space<vmem>>, vector<32x96xbf16>
    %cst = arith.constant dense<0.000000e+00> : vector<16x96xf32>
    %6 = tpu.matmul %4, %5, %cst {dimension_numbers = #tpu.dot_dimension_numbers<[1], [0], [0], [1], [0, 0, 1, 1], [], []>} : vector<16x32xbf16>, vector<32x96xbf16>, vector<16x96xf32> -> vector<16x96xf32>
    %7 = arith.addf %3, %6 : vector<16x96xf32>
    %c0_6 = arith.constant 0 : index
    %c0_7 = arith.constant 0 : index
    %8 = vector.load %arg7[%c0_6, %c0_7] : memref<16x96xf32, #tpu.memory_space<vmem>>, vector<16x96xf32>
    tpu.vector_store %arg7[%c0_6, %c0_7], %7 {strides = array<i32>} : memref<16x96xf32, #tpu.memory_space<vmem>>, vector<16x96xf32>,
    %c0_i32_8 = arith.constant 0 : i32
    %9 = arith.cmpi eq, %arg2, %c0_i32_8 : i32
    %10 = arith.extui %9 : i1 to i32
    %c0_i32_9 = arith.constant 0 : i32
    %11 = arith.cmpi ne, %10, %c0_i32_9 : i32
    scf.if %11 {
      %c0_10 = arith.constant 0 : index
      %c0_11 = arith.constant 0 : index
      %12 = vector.load %arg7[%c0_10, %c0_11] : memref<16x96xf32, #tpu.memory_space<vmem>>, vector<16x96xf32>
      %c0_12 = arith.constant 0 : index
      %c0_13 = arith.constant 0 : index
      %13 = vector.load %arg5[%c0_12, %c0_13] : memref<1x96xf32, #tpu.memory_space<vmem>>, vector<1x96xf32>
      %14 = vector.broadcast %13 : vector<1x96xf32> to vector<16x96xf32>
      %15 = arith.addf %12, %14 : vector<16x96xf32>
      %16 = arith.truncf %15 : vector<16x96xf32> to vector<16x96xbf16>
      %c0_14 = arith.constant 0 : index
      %c0_15 = arith.constant 0 : index
      %17 = vector.load %arg6[%c0_14, %c0_15] : memref<16x96xbf16, #tpu.memory_space<vmem>>, vector<16x96xbf16>
      tpu.vector_store %arg6[%c0_14, %c0_15], %16 {strides = array<i32>} : memref<16x96xbf16, #tpu.memory_space<vmem>>, vector<16x96xbf16>,
    } else {
    }
    return
  }
  func.func @transform_0(%arg0: i32, %arg1: i32, %arg2: i32) -> (i32, i32) {
    %c0_i32 = arith.constant 0 : i32
    return %arg0, %arg2 : i32, i32
  }
  func.func @transform_1(%arg0: i32, %arg1: i32, %arg2: i32) -> (i32, i32) {
    %c0_i32 = arith.constant 0 : i32
    return %arg2, %arg1 : i32, i32
  }
  func.func @transform_2(%arg0: i32, %arg1: i32, %arg2: i32) -> (i32, i32) {
    %c0_i32 = arith.constant 0 : i32
    %c0_i32_0 = arith.constant 0 : i32
    return %c0_i32, %arg1 : i32, i32
  }
  func.func @transform_3(%arg0: i32, %arg1: i32, %arg2: i32) -> (i32, i32) {
    %c0_i32 = arith.constant 0 : i32
    return %arg0, %arg1 : i32, i32
  }
}

module attributes {stable_mosaic.version = 11 : i64} {
  func.func @_mha_kernel(%arg0: i32, %arg1: i32, %arg2: memref<1x8x96xbf16, #tpu.memory_space<vmem>>, %arg3: memref<1x8x96xbf16, #tpu.memory_space<vmem>>, %arg4: memref<1x8x32xbf16, #tpu.memory_space<vmem>>) attributes {dimension_semantics = [#tpu.dimension_semantics<parallel>, #tpu.dimension_semantics<parallel>], iteration_bounds = array<i64: 2, 1>, scalar_prefetch = 0 : i64, scratch_operands = 0 : i64, tpu.core_type = #tpu.core_type<tc>, window_params = [{transform_indices = @transform_0, window_bounds = array<i64: 1, 8, 96>}, {transform_indices = @transform_1, window_bounds = array<i64: 1, 8, 96>}, {transform_indices = @transform_2, window_bounds = array<i64: 1, 8, 32>}]} {
    %c0 = arith.constant 0 : index
    %c0_0 = arith.constant 0 : index
    %c0_1 = arith.constant 0 : index
    %0 = vector.load %arg2[%c0, %c0_0, %c0_1] : memref<1x8x96xbf16, #tpu.memory_space<vmem>>, vector<1x8x96xbf16>
    %1 = vector.shape_cast %0 : vector<1x8x96xbf16> to vector<8x96xbf16>
    %c0_2 = arith.constant 0 : index
    %c0_3 = arith.constant 0 : index
    %c0_4 = arith.constant 0 : index
    %2 = vector.load %arg3[%c0_2, %c0_3, %c0_4] : memref<1x8x96xbf16, #tpu.memory_space<vmem>>, vector<1x8x96xbf16>
    %3 = vector.shape_cast %2 : vector<1x8x96xbf16> to vector<8x96xbf16>
    %4 = vector.extract_strided_slice %1 {offsets = [0, 0], sizes = [8, 8], strides = [1, 1]} : vector<8x96xbf16> to vector<8x8xbf16>
    %5 = vector.extract_strided_slice %3 {offsets = [0, 32], sizes = [8, 8], strides = [1, 1]} : vector<8x96xbf16> to vector<8x8xbf16>
    %6 = vector.extract_strided_slice %3 {offsets = [0, 64], sizes = [8, 8], strides = [1, 1]} : vector<8x96xbf16> to vector<8x8xbf16>
    %cst = arith.constant dense<0.000000e+00> : vector<8x8xf32>
    %7 = tpu.matmul %4, %5, %cst {dimension_numbers = #tpu.dot_dimension_numbers<[1], [1], [0], [0], [0, 0, 1, 0], [], []>} : vector<8x8xbf16>, vector<8x8xbf16>, vector<8x8xf32> -> vector<8x8xf32>
    %cst_5 = arith.constant dense<0xFF800000> : vector<8xf32>
    %8 = vector.multi_reduction <maximumf>, %7, %cst_5 [1] : vector<8x8xf32> to vector<8xf32>
    %9 = vector.shape_cast %8 : vector<8xf32> to vector<8x1xf32>
    %10 = vector.broadcast %9 : vector<8x1xf32> to vector<8x8xf32>
    %11 = arith.subf %7, %10 : vector<8x8xf32>
    %12 = math.exp %11 : vector<8x8xf32>
    %cst_6 = arith.constant dense<0.000000e+00> : vector<8xf32>
    %13 = vector.multi_reduction <add>, %12, %cst_6 [1] : vector<8x8xf32> to vector<8xf32>
    %14 = vector.shape_cast %13 : vector<8xf32> to vector<8x1xf32>
    %15 = tpu.reciprocal %14 {approx = true} : vector<8x1xf32> -> vector<8x1xf32>
    %16 = vector.broadcast %15 : vector<8x1xf32> to vector<8x8xf32>
    %17 = arith.mulf %12, %16 : vector<8x8xf32>
    %18 = arith.truncf %17 : vector<8x8xf32> to vector<8x8xbf16>
    %cst_7 = arith.constant dense<0.000000e+00> : vector<8x8xf32>
    %19 = tpu.matmul %18, %6, %cst_7 {dimension_numbers = #tpu.dot_dimension_numbers<[1], [0], [0], [1], [0, 0, 1, 1], [], []>} : vector<8x8xbf16>, vector<8x8xbf16>, vector<8x8xf32> -> vector<8x8xf32>
    %20 = arith.truncf %19 : vector<8x8xf32> to vector<8x8xbf16>
    %c0_8 = arith.constant 0 : index
    %c0_9 = arith.constant 0 : index
    %c0_10 = arith.constant 0 : index
    %21 = vector.load %arg4[%c0_8, %c0_9, %c0_10] : memref<1x8x32xbf16, #tpu.memory_space<vmem>>, vector<1x8x8xbf16>
    %22 = vector.shape_cast %21 : vector<1x8x8xbf16> to vector<8x8xbf16>
    %23 = vector.shape_cast %20 : vector<8x8xbf16> to vector<1x8x8xbf16>
    tpu.vector_store %arg4[%c0_8, %c0_9, %c0_10], %23 {strides = array<i32>} : memref<1x8x32xbf16, #tpu.memory_space<vmem>>, vector<1x8x8xbf16>,
    %24 = vector.extract_strided_slice %1 {offsets = [0, 8], sizes = [8, 8], strides = [1, 1]} : vector<8x96xbf16> to vector<8x8xbf16>
    %25 = vector.extract_strided_slice %3 {offsets = [0, 40], sizes = [8, 8], strides = [1, 1]} : vector<8x96xbf16> to vector<8x8xbf16>
    %26 = vector.extract_strided_slice %3 {offsets = [0, 72], sizes = [8, 8], strides = [1, 1]} : vector<8x96xbf16> to vector<8x8xbf16>
    %cst_11 = arith.constant dense<0.000000e+00> : vector<8x8xf32>
    %27 = tpu.matmul %24, %25, %cst_11 {dimension_numbers = #tpu.dot_dimension_numbers<[1], [1], [0], [0], [0, 0, 1, 0], [], []>} : vector<8x8xbf16>, vector<8x8xbf16>, vector<8x8xf32> -> vector<8x8xf32>
    %cst_12 = arith.constant dense<0xFF800000> : vector<8xf32>
    %28 = vector.multi_reduction <maximumf>, %27, %cst_12 [1] : vector<8x8xf32> to vector<8xf32>
    %29 = vector.shape_cast %28 : vector<8xf32> to vector<8x1xf32>
    %30 = vector.broadcast %29 : vector<8x1xf32> to vector<8x8xf32>
    %31 = arith.subf %27, %30 : vector<8x8xf32>
    %32 = math.exp %31 : vector<8x8xf32>
    %cst_13 = arith.constant dense<0.000000e+00> : vector<8xf32>
    %33 = vector.multi_reduction <add>, %32, %cst_13 [1] : vector<8x8xf32> to vector<8xf32>
    %34 = vector.shape_cast %33 : vector<8xf32> to vector<8x1xf32>
    %35 = tpu.reciprocal %34 {approx = true} : vector<8x1xf32> -> vector<8x1xf32>
    %36 = vector.broadcast %35 : vector<8x1xf32> to vector<8x8xf32>
    %37 = arith.mulf %32, %36 : vector<8x8xf32>
    %38 = arith.truncf %37 : vector<8x8xf32> to vector<8x8xbf16>
    %cst_14 = arith.constant dense<0.000000e+00> : vector<8x8xf32>
    %39 = tpu.matmul %38, %26, %cst_14 {dimension_numbers = #tpu.dot_dimension_numbers<[1], [0], [0], [1], [0, 0, 1, 1], [], []>} : vector<8x8xbf16>, vector<8x8xbf16>, vector<8x8xf32> -> vector<8x8xf32>
    %40 = arith.truncf %39 : vector<8x8xf32> to vector<8x8xbf16>
    %c0_15 = arith.constant 0 : index
    %c0_16 = arith.constant 0 : index
    %c8 = arith.constant 8 : index
    %41 = vector.load %arg4[%c0_15, %c0_16, %c8] : memref<1x8x32xbf16, #tpu.memory_space<vmem>>, vector<1x8x8xbf16>
    %42 = vector.shape_cast %41 : vector<1x8x8xbf16> to vector<8x8xbf16>
    %43 = vector.shape_cast %40 : vector<8x8xbf16> to vector<1x8x8xbf16>
    tpu.vector_store %arg4[%c0_15, %c0_16, %c8], %43 {strides = array<i32>} : memref<1x8x32xbf16, #tpu.memory_space<vmem>>, vector<1x8x8xbf16>,
    %44 = vector.extract_strided_slice %1 {offsets = [0, 16], sizes = [8, 8], strides = [1, 1]} : vector<8x96xbf16> to vector<8x8xbf16>
    %45 = vector.extract_strided_slice %3 {offsets = [0, 48], sizes = [8, 8], strides = [1, 1]} : vector<8x96xbf16> to vector<8x8xbf16>
    %46 = vector.extract_strided_slice %3 {offsets = [0, 80], sizes = [8, 8], strides = [1, 1]} : vector<8x96xbf16> to vector<8x8xbf16>
    %cst_17 = arith.constant dense<0.000000e+00> : vector<8x8xf32>
    %47 = tpu.matmul %44, %45, %cst_17 {dimension_numbers = #tpu.dot_dimension_numbers<[1], [1], [0], [0], [0, 0, 1, 0], [], []>} : vector<8x8xbf16>, vector<8x8xbf16>, vector<8x8xf32> -> vector<8x8xf32>
    %cst_18 = arith.constant dense<0xFF800000> : vector<8xf32>
    %48 = vector.multi_reduction <maximumf>, %47, %cst_18 [1] : vector<8x8xf32> to vector<8xf32>
    %49 = vector.shape_cast %48 : vector<8xf32> to vector<8x1xf32>
    %50 = vector.broadcast %49 : vector<8x1xf32> to vector<8x8xf32>
    %51 = arith.subf %47, %50 : vector<8x8xf32>
    %52 = math.exp %51 : vector<8x8xf32>
    %cst_19 = arith.constant dense<0.000000e+00> : vector<8xf32>
    %53 = vector.multi_reduction <add>, %52, %cst_19 [1] : vector<8x8xf32> to vector<8xf32>
    %54 = vector.shape_cast %53 : vector<8xf32> to vector<8x1xf32>
    %55 = tpu.reciprocal %54 {approx = true} : vector<8x1xf32> -> vector<8x1xf32>
    %56 = vector.broadcast %55 : vector<8x1xf32> to vector<8x8xf32>
    %57 = arith.mulf %52, %56 : vector<8x8xf32>
    %58 = arith.truncf %57 : vector<8x8xf32> to vector<8x8xbf16>
    %cst_20 = arith.constant dense<0.000000e+00> : vector<8x8xf32>
    %59 = tpu.matmul %58, %46, %cst_20 {dimension_numbers = #tpu.dot_dimension_numbers<[1], [0], [0], [1], [0, 0, 1, 1], [], []>} : vector<8x8xbf16>, vector<8x8xbf16>, vector<8x8xf32> -> vector<8x8xf32>
    %60 = arith.truncf %59 : vector<8x8xf32> to vector<8x8xbf16>
    %c0_21 = arith.constant 0 : index
    %c0_22 = arith.constant 0 : index
    %c16 = arith.constant 16 : index
    %61 = vector.load %arg4[%c0_21, %c0_22, %c16] : memref<1x8x32xbf16, #tpu.memory_space<vmem>>, vector<1x8x8xbf16>
    %62 = vector.shape_cast %61 : vector<1x8x8xbf16> to vector<8x8xbf16>
    %63 = vector.shape_cast %60 : vector<8x8xbf16> to vector<1x8x8xbf16>
    tpu.vector_store %arg4[%c0_21, %c0_22, %c16], %63 {strides = array<i32>} : memref<1x8x32xbf16, #tpu.memory_space<vmem>>, vector<1x8x8xbf16>,
    %64 = vector.extract_strided_slice %1 {offsets = [0, 24], sizes = [8, 8], strides = [1, 1]} : vector<8x96xbf16> to vector<8x8xbf16>
    %65 = vector.extract_strided_slice %3 {offsets = [0, 56], sizes = [8, 8], strides = [1, 1]} : vector<8x96xbf16> to vector<8x8xbf16>
    %66 = vector.extract_strided_slice %3 {offsets = [0, 88], sizes = [8, 8], strides = [1, 1]} : vector<8x96xbf16> to vector<8x8xbf16>
    %cst_23 = arith.constant dense<0.000000e+00> : vector<8x8xf32>
    %67 = tpu.matmul %64, %65, %cst_23 {dimension_numbers = #tpu.dot_dimension_numbers<[1], [1], [0], [0], [0, 0, 1, 0], [], []>} : vector<8x8xbf16>, vector<8x8xbf16>, vector<8x8xf32> -> vector<8x8xf32>
    %cst_24 = arith.constant dense<0xFF800000> : vector<8xf32>
    %68 = vector.multi_reduction <maximumf>, %67, %cst_24 [1] : vector<8x8xf32> to vector<8xf32>
    %69 = vector.shape_cast %68 : vector<8xf32> to vector<8x1xf32>
    %70 = vector.broadcast %69 : vector<8x1xf32> to vector<8x8xf32>
    %71 = arith.subf %67, %70 : vector<8x8xf32>
    %72 = math.exp %71 : vector<8x8xf32>
    %cst_25 = arith.constant dense<0.000000e+00> : vector<8xf32>
    %73 = vector.multi_reduction <add>, %72, %cst_25 [1] : vector<8x8xf32> to vector<8xf32>
    %74 = vector.shape_cast %73 : vector<8xf32> to vector<8x1xf32>
    %75 = tpu.reciprocal %74 {approx = true} : vector<8x1xf32> -> vector<8x1xf32>
    %76 = vector.broadcast %75 : vector<8x1xf32> to vector<8x8xf32>
    %77 = arith.mulf %72, %76 : vector<8x8xf32>
    %78 = arith.truncf %77 : vector<8x8xf32> to vector<8x8xbf16>
    %cst_26 = arith.constant dense<0.000000e+00> : vector<8x8xf32>
    %79 = tpu.matmul %78, %66, %cst_26 {dimension_numbers = #tpu.dot_dimension_numbers<[1], [0], [0], [1], [0, 0, 1, 1], [], []>} : vector<8x8xbf16>, vector<8x8xbf16>, vector<8x8xf32> -> vector<8x8xf32>
    %80 = arith.truncf %79 : vector<8x8xf32> to vector<8x8xbf16>
    %c0_27 = arith.constant 0 : index
    %c0_28 = arith.constant 0 : index
    %c24 = arith.constant 24 : index
    %81 = vector.load %arg4[%c0_27, %c0_28, %c24] : memref<1x8x32xbf16, #tpu.memory_space<vmem>>, vector<1x8x8xbf16>
    %82 = vector.shape_cast %81 : vector<1x8x8xbf16> to vector<8x8xbf16>
    %83 = vector.shape_cast %80 : vector<8x8xbf16> to vector<1x8x8xbf16>
    tpu.vector_store %arg4[%c0_27, %c0_28, %c24], %83 {strides = array<i32>} : memref<1x8x32xbf16, #tpu.memory_space<vmem>>, vector<1x8x8xbf16>,
    return
  }
  func.func @transform_0(%arg0: i32, %arg1: i32) -> (i32, i32, i32) {
    %c0_i32 = arith.constant 0 : i32
    %c0_i32_0 = arith.constant 0 : i32
    return %arg0, %arg1, %c0_i32 : i32, i32, i32
  }
  func.func @transform_1(%arg0: i32, %arg1: i32) -> (i32, i32, i32) {
    %c0_i32 = arith.constant 0 : i32
    %c0_i32_0 = arith.constant 0 : i32
    %c0_i32_1 = arith.constant 0 : i32
    return %arg0, %c0_i32, %c0_i32_0 : i32, i32, i32
  }
  func.func @transform_2(%arg0: i32, %arg1: i32) -> (i32, i32, i32) {
    %c0_i32 = arith.constant 0 : i32
    %c0_i32_0 = arith.constant 0 : i32
    return %arg0, %arg1, %c0_i32 : i32, i32, i32
  }
}

module attributes {stable_mosaic.version = 11 : i64} {
  func.func @_embed_ln_kernel(%arg0: i32, %arg1: memref<1x8x32xbf16, #tpu.memory_space<vmem>>, %arg2: memref<8x32xf32, #tpu.memory_space<vmem>>, %arg3: memref<1x32xf32, #tpu.memory_space<vmem>>, %arg4: memref<1x32xf32, #tpu.memory_space<vmem>>, %arg5: memref<1x8x32xbf16, #tpu.memory_space<vmem>>) attributes {dimension_semantics = [#tpu.dimension_semantics<parallel>], iteration_bounds = array<i64: 2>, scalar_prefetch = 0 : i64, scratch_operands = 0 : i64, tpu.core_type = #tpu.core_type<tc>, window_params = [{transform_indices = @transform_0, window_bounds = array<i64: 1, 8, 32>}, {pipeline_mode = #tpu.pipeline_mode<synchronous>, transform_indices = @transform_1, window_bounds = array<i64: 8, 32>}, {pipeline_mode = #tpu.pipeline_mode<synchronous>, transform_indices = @transform_2, window_bounds = array<i64: 1, 32>}, {pipeline_mode = #tpu.pipeline_mode<synchronous>, transform_indices = @transform_3, window_bounds = array<i64: 1, 32>}, {transform_indices = @transform_4, window_bounds = array<i64: 1, 8, 32>}]} {
    %c0 = arith.constant 0 : index
    %c0_0 = arith.constant 0 : index
    %c0_1 = arith.constant 0 : index
    %0 = vector.load %arg1[%c0, %c0_0, %c0_1] : memref<1x8x32xbf16, #tpu.memory_space<vmem>>, vector<1x8x32xbf16>
    %1 = vector.shape_cast %0 : vector<1x8x32xbf16> to vector<8x32xbf16>
    %2 = arith.extf %1 : vector<8x32xbf16> to vector<8x32xf32>
    %c0_2 = arith.constant 0 : index
    %c0_3 = arith.constant 0 : index
    %3 = vector.load %arg2[%c0_2, %c0_3] : memref<8x32xf32, #tpu.memory_space<vmem>>, vector<8x32xf32>
    %4 = arith.addf %2, %3 : vector<8x32xf32>
    %cst = arith.constant dense<0.000000e+00> : vector<8xf32>
    %5 = vector.multi_reduction <add>, %4, %cst [1] : vector<8x32xf32> to vector<8xf32>
    %6 = vector.shape_cast %5 : vector<8xf32> to vector<8x1xf32>
    %cst_4 = arith.constant 3.200000e+01 : f32
    %7 = vector.broadcast %cst_4 : f32 to vector<8x1xf32>
    %8 = arith.divf %6, %7 : vector<8x1xf32>
    %9 = vector.broadcast %8 : vector<8x1xf32> to vector<8x32xf32>
    %10 = arith.subf %4, %9 : vector<8x32xf32>
    %11 = arith.mulf %10, %10 : vector<8x32xf32>
    %cst_5 = arith.constant dense<0.000000e+00> : vector<8xf32>
    %12 = vector.multi_reduction <add>, %11, %cst_5 [1] : vector<8x32xf32> to vector<8xf32>
    %13 = vector.shape_cast %12 : vector<8xf32> to vector<8x1xf32>
    %cst_6 = arith.constant 3.200000e+01 : f32
    %14 = vector.broadcast %cst_6 : f32 to vector<8x1xf32>
    %15 = arith.divf %13, %14 : vector<8x1xf32>
    %16 = vector.broadcast %8 : vector<8x1xf32> to vector<8x32xf32>
    %17 = arith.subf %4, %16 : vector<8x32xf32>
    %cst_7 = arith.constant 9.99999996E-13 : f32
    %18 = vector.broadcast %cst_7 : f32 to vector<8x1xf32>
    %19 = arith.addf %15, %18 : vector<8x1xf32>
    %20 = math.rsqrt %19 : vector<8x1xf32>
    %21 = vector.broadcast %20 : vector<8x1xf32> to vector<8x32xf32>
    %22 = arith.mulf %17, %21 : vector<8x32xf32>
    %c0_8 = arith.constant 0 : index
    %c0_9 = arith.constant 0 : index
    %23 = vector.load %arg3[%c0_8, %c0_9] : memref<1x32xf32, #tpu.memory_space<vmem>>, vector<1x32xf32>
    %24 = vector.broadcast %23 : vector<1x32xf32> to vector<8x32xf32>
    %25 = arith.mulf %22, %24 : vector<8x32xf32>
    %c0_10 = arith.constant 0 : index
    %c0_11 = arith.constant 0 : index
    %26 = vector.load %arg4[%c0_10, %c0_11] : memref<1x32xf32, #tpu.memory_space<vmem>>, vector<1x32xf32>
    %27 = vector.broadcast %26 : vector<1x32xf32> to vector<8x32xf32>
    %28 = arith.addf %25, %27 : vector<8x32xf32>
    %29 = arith.truncf %28 : vector<8x32xf32> to vector<8x32xbf16>
    %c0_12 = arith.constant 0 : index
    %c0_13 = arith.constant 0 : index
    %c0_14 = arith.constant 0 : index
    %30 = vector.load %arg5[%c0_12, %c0_13, %c0_14] : memref<1x8x32xbf16, #tpu.memory_space<vmem>>, vector<1x8x32xbf16>
    %31 = vector.shape_cast %30 : vector<1x8x32xbf16> to vector<8x32xbf16>
    %32 = vector.shape_cast %29 : vector<8x32xbf16> to vector<1x8x32xbf16>
    tpu.vector_store %arg5[%c0_12, %c0_13, %c0_14], %32 {strides = array<i32>} : memref<1x8x32xbf16, #tpu.memory_space<vmem>>, vector<1x8x32xbf16>,
    return
  }
  func.func @transform_0(%arg0: i32) -> (i32, i32, i32) {
    %c0_i32 = arith.constant 0 : i32
    %c0_i32_0 = arith.constant 0 : i32
    %c0_i32_1 = arith.constant 0 : i32
    return %arg0, %c0_i32, %c0_i32_0 : i32, i32, i32
  }
  func.func @transform_1(%arg0: i32) -> (i32, i32) {
    %c0_i32 = arith.constant 0 : i32
    %c0_i32_0 = arith.constant 0 : i32
    %c0_i32_1 = arith.constant 0 : i32
    return %c0_i32, %c0_i32_0 : i32, i32
  }
  func.func @transform_2(%arg0: i32) -> (i32, i32) {
    %c0_i32 = arith.constant 0 : i32
    %c0_i32_0 = arith.constant 0 : i32
    %c0_i32_1 = arith.constant 0 : i32
    return %c0_i32, %c0_i32_0 : i32, i32
  }
  func.func @transform_3(%arg0: i32) -> (i32, i32) {
    %c0_i32 = arith.constant 0 : i32
    %c0_i32_0 = arith.constant 0 : i32
    %c0_i32_1 = arith.constant 0 : i32
    return %c0_i32, %c0_i32_0 : i32, i32
  }
  func.func @transform_4(%arg0: i32) -> (i32, i32, i32) {
    %c0_i32 = arith.constant 0 : i32
    %c0_i32_0 = arith.constant 0 : i32
    %c0_i32_1 = arith.constant 0 : i32
    return %arg0, %c0_i32, %c0_i32_0 : i32, i32, i32
  }
}

module attributes {stable_mosaic.version = 11 : i64} {
  func.func @_linear_kernel(%arg0: i32, %arg1: i32, %arg2: i32, %arg3: memref<16x16xf32, #tpu.memory_space<vmem>>, %arg4: memref<16x32xbf16, #tpu.memory_space<vmem>>, %arg5: memref<1x32xf32, #tpu.memory_space<vmem>>, %arg6: memref<16x32xbf16, #tpu.memory_space<vmem>>, %arg7: memref<16x32xf32, #tpu.memory_space<vmem>>) attributes {dimension_semantics = [#tpu.dimension_semantics<parallel>, #tpu.dimension_semantics<parallel>, #tpu.dimension_semantics<arbitrary>], iteration_bounds = array<i64: 1, 1, 1>, scalar_prefetch = 0 : i64, scratch_operands = 1 : i64, tpu.core_type = #tpu.core_type<tc>, window_params = [{transform_indices = @transform_0, window_bounds = array<i64: 16, 16>}, {transform_indices = @transform_1, window_bounds = array<i64: 16, 32>}, {transform_indices = @transform_2, window_bounds = array<i64: 1, 32>}, {transform_indices = @transform_3, window_bounds = array<i64: 16, 32>}]} {
    %c0_i32 = arith.constant 0 : i32
    %0 = arith.cmpi eq, %arg2, %c0_i32 : i32
    %1 = arith.extui %0 : i1 to i32
    %c0_i32_0 = arith.constant 0 : i32
    %2 = arith.cmpi ne, %1, %c0_i32_0 : i32
    scf.if %2 {
      %cst_10 = arith.constant 0.000000e+00 : f32
      %13 = vector.broadcast %cst_10 : f32 to vector<16x32xf32>
      %c0_11 = arith.constant 0 : index
      %c0_12 = arith.constant 0 : index
      %14 = vector.load %arg7[%c0_11, %c0_12] : memref<16x32xf32, #tpu.memory_space<vmem>>, vector<16x32xf32>
      tpu.vector_store %arg7[%c0_11, %c0_12], %13 {strides = array<i32>} : memref<16x32xf32, #tpu.memory_space<vmem>>, vector<16x32xf32>,
    } else {
    }
    %c0 = arith.constant 0 : index
    %c0_1 = arith.constant 0 : index
    %3 = vector.load %arg7[%c0, %c0_1] : memref<16x32xf32, #tpu.memory_space<vmem>>, vector<16x32xf32>
    %c0_2 = arith.constant 0 : index
    %c0_3 = arith.constant 0 : index
    %4 = vector.load %arg3[%c0_2, %c0_3] : memref<16x16xf32, #tpu.memory_space<vmem>>, vector<16x16xf32>
    %5 = arith.truncf %4 : vector<16x16xf32> to vector<16x16xbf16>
    %c0_4 = arith.constant 0 : index
    %c0_5 = arith.constant 0 : index
    %6 = vector.load %arg4[%c0_4, %c0_5] : memref<16x32xbf16, #tpu.memory_space<vmem>>, vector<16x32xbf16>
    %cst = arith.constant dense<0.000000e+00> : vector<16x32xf32>
    %7 = tpu.matmul %5, %6, %cst {dimension_numbers = #tpu.dot_dimension_numbers<[1], [0], [0], [1], [0, 0, 1, 1], [], []>} : vector<16x16xbf16>, vector<16x32xbf16>, vector<16x32xf32> -> vector<16x32xf32>
    %8 = arith.addf %3, %7 : vector<16x32xf32>
    %c0_6 = arith.constant 0 : index
    %c0_7 = arith.constant 0 : index
    %9 = vector.load %arg7[%c0_6, %c0_7] : memref<16x32xf32, #tpu.memory_space<vmem>>, vector<16x32xf32>
    tpu.vector_store %arg7[%c0_6, %c0_7], %8 {strides = array<i32>} : memref<16x32xf32, #tpu.memory_space<vmem>>, vector<16x32xf32>,
    %c0_i32_8 = arith.constant 0 : i32
    %10 = arith.cmpi eq, %arg2, %c0_i32_8 : i32
    %11 = arith.extui %10 : i1 to i32
    %c0_i32_9 = arith.constant 0 : i32
    %12 = arith.cmpi ne, %11, %c0_i32_9 : i32
    scf.if %12 {
      %c0_10 = arith.constant 0 : index
      %c0_11 = arith.constant 0 : index
      %13 = vector.load %arg7[%c0_10, %c0_11] : memref<16x32xf32, #tpu.memory_space<vmem>>, vector<16x32xf32>
      %c0_12 = arith.constant 0 : index
      %c0_13 = arith.constant 0 : index
      %14 = vector.load %arg5[%c0_12, %c0_13] : memref<1x32xf32, #tpu.memory_space<vmem>>, vector<1x32xf32>
      %15 = vector.broadcast %14 : vector<1x32xf32> to vector<16x32xf32>
      %16 = arith.addf %13, %15 : vector<16x32xf32>
      %17 = arith.truncf %16 : vector<16x32xf32> to vector<16x32xbf16>
      %c0_14 = arith.constant 0 : index
      %c0_15 = arith.constant 0 : index
      %18 = vector.load %arg6[%c0_14, %c0_15] : memref<16x32xbf16, #tpu.memory_space<vmem>>, vector<16x32xbf16>
      tpu.vector_store %arg6[%c0_14, %c0_15], %17 {strides = array<i32>} : memref<16x32xbf16, #tpu.memory_space<vmem>>, vector<16x32xbf16>,
    } else {
    }
    return
  }
  func.func @transform_0(%arg0: i32, %arg1: i32, %arg2: i32) -> (i32, i32) {
    %c0_i32 = arith.constant 0 : i32
    return %arg0, %arg2 : i32, i32
  }
  func.func @transform_1(%arg0: i32, %arg1: i32, %arg2: i32) -> (i32, i32) {
    %c0_i32 = arith.constant 0 : i32
    return %arg2, %arg1 : i32, i32
  }
  func.func @transform_2(%arg0: i32, %arg1: i32, %arg2: i32) -> (i32, i32) {
    %c0_i32 = arith.constant 0 : i32
    %c0_i32_0 = arith.constant 0 : i32
    return %c0_i32, %arg1 : i32, i32
  }
  func.func @transform_3(%arg0: i32, %arg1: i32, %arg2: i32) -> (i32, i32) {
    %c0_i32 = arith.constant 0 : i32
    return %arg0, %arg1 : i32, i32
  }
}

module attributes {stable_mosaic.version = 11 : i64} {
  func.func @_linear_kernel(%arg0: i32, %arg1: i32, %arg2: i32, %arg3: memref<16x32xbf16, #tpu.memory_space<vmem>>, %arg4: memref<32x64xbf16, #tpu.memory_space<vmem>>, %arg5: memref<1x64xf32, #tpu.memory_space<vmem>>, %arg6: memref<16x64xbf16, #tpu.memory_space<vmem>>, %arg7: memref<16x64xf32, #tpu.memory_space<vmem>>) attributes {dimension_semantics = [#tpu.dimension_semantics<parallel>, #tpu.dimension_semantics<parallel>, #tpu.dimension_semantics<arbitrary>], iteration_bounds = array<i64: 1, 1, 1>, scalar_prefetch = 0 : i64, scratch_operands = 1 : i64, tpu.core_type = #tpu.core_type<tc>, window_params = [{transform_indices = @transform_0, window_bounds = array<i64: 16, 32>}, {transform_indices = @transform_1, window_bounds = array<i64: 32, 64>}, {transform_indices = @transform_2, window_bounds = array<i64: 1, 64>}, {transform_indices = @transform_3, window_bounds = array<i64: 16, 64>}]} {
    %c0_i32 = arith.constant 0 : i32
    %0 = arith.cmpi eq, %arg2, %c0_i32 : i32
    %1 = arith.extui %0 : i1 to i32
    %c0_i32_0 = arith.constant 0 : i32
    %2 = arith.cmpi ne, %1, %c0_i32_0 : i32
    scf.if %2 {
      %cst_10 = arith.constant 0.000000e+00 : f32
      %12 = vector.broadcast %cst_10 : f32 to vector<16x64xf32>
      %c0_11 = arith.constant 0 : index
      %c0_12 = arith.constant 0 : index
      %13 = vector.load %arg7[%c0_11, %c0_12] : memref<16x64xf32, #tpu.memory_space<vmem>>, vector<16x64xf32>
      tpu.vector_store %arg7[%c0_11, %c0_12], %12 {strides = array<i32>} : memref<16x64xf32, #tpu.memory_space<vmem>>, vector<16x64xf32>,
    } else {
    }
    %c0 = arith.constant 0 : index
    %c0_1 = arith.constant 0 : index
    %3 = vector.load %arg7[%c0, %c0_1] : memref<16x64xf32, #tpu.memory_space<vmem>>, vector<16x64xf32>
    %c0_2 = arith.constant 0 : index
    %c0_3 = arith.constant 0 : index
    %4 = vector.load %arg3[%c0_2, %c0_3] : memref<16x32xbf16, #tpu.memory_space<vmem>>, vector<16x32xbf16>
    %c0_4 = arith.constant 0 : index
    %c0_5 = arith.constant 0 : index
    %5 = vector.load %arg4[%c0_4, %c0_5] : memref<32x64xbf16, #tpu.memory_space<vmem>>, vector<32x64xbf16>
    %cst = arith.constant dense<0.000000e+00> : vector<16x64xf32>
    %6 = tpu.matmul %4, %5, %cst {dimension_numbers = #tpu.dot_dimension_numbers<[1], [0], [0], [1], [0, 0, 1, 1], [], []>} : vector<16x32xbf16>, vector<32x64xbf16>, vector<16x64xf32> -> vector<16x64xf32>
    %7 = arith.addf %3, %6 : vector<16x64xf32>
    %c0_6 = arith.constant 0 : index
    %c0_7 = arith.constant 0 : index
    %8 = vector.load %arg7[%c0_6, %c0_7] : memref<16x64xf32, #tpu.memory_space<vmem>>, vector<16x64xf32>
    tpu.vector_store %arg7[%c0_6, %c0_7], %7 {strides = array<i32>} : memref<16x64xf32, #tpu.memory_space<vmem>>, vector<16x64xf32>,
    %c0_i32_8 = arith.constant 0 : i32
    %9 = arith.cmpi eq, %arg2, %c0_i32_8 : i32
    %10 = arith.extui %9 : i1 to i32
    %c0_i32_9 = arith.constant 0 : i32
    %11 = arith.cmpi ne, %10, %c0_i32_9 : i32
    scf.if %11 {
      %c0_10 = arith.constant 0 : index
      %c0_11 = arith.constant 0 : index
      %12 = vector.load %arg7[%c0_10, %c0_11] : memref<16x64xf32, #tpu.memory_space<vmem>>, vector<16x64xf32>
      %c0_12 = arith.constant 0 : index
      %c0_13 = arith.constant 0 : index
      %13 = vector.load %arg5[%c0_12, %c0_13] : memref<1x64xf32, #tpu.memory_space<vmem>>, vector<1x64xf32>
      %14 = vector.broadcast %13 : vector<1x64xf32> to vector<16x64xf32>
      %15 = arith.addf %12, %14 : vector<16x64xf32>
      %16 = arith.mulf %15, %15 : vector<16x64xf32>
      %17 = arith.mulf %15, %16 : vector<16x64xf32>
      %cst_14 = arith.constant 4.471500e-02 : f32
      %18 = vector.broadcast %cst_14 : f32 to vector<16x64xf32>
      %19 = arith.mulf %18, %17 : vector<16x64xf32>
      %20 = arith.addf %15, %19 : vector<16x64xf32>
      %cst_15 = arith.constant 0.797884583 : f32
      %21 = vector.broadcast %cst_15 : f32 to vector<16x64xf32>
      %22 = arith.mulf %21, %20 : vector<16x64xf32>
      %23 = math.tanh %22 : vector<16x64xf32>
      %cst_16 = arith.constant 1.000000e+00 : f32
      %24 = vector.broadcast %cst_16 : f32 to vector<16x64xf32>
      %25 = arith.addf %24, %23 : vector<16x64xf32>
      %cst_17 = arith.constant 5.000000e-01 : f32
      %26 = vector.broadcast %cst_17 : f32 to vector<16x64xf32>
      %27 = arith.mulf %26, %25 : vector<16x64xf32>
      %28 = arith.mulf %15, %27 : vector<16x64xf32>
      %29 = arith.truncf %28 : vector<16x64xf32> to vector<16x64xbf16>
      %c0_18 = arith.constant 0 : index
      %c0_19 = arith.constant 0 : index
      %30 = vector.load %arg6[%c0_18, %c0_19] : memref<16x64xbf16, #tpu.memory_space<vmem>>, vector<16x64xbf16>
      tpu.vector_store %arg6[%c0_18, %c0_19], %29 {strides = array<i32>} : memref<16x64xbf16, #tpu.memory_space<vmem>>, vector<16x64xbf16>,
    } else {
    }
    return
  }
  func.func @transform_0(%arg0: i32, %arg1: i32, %arg2: i32) -> (i32, i32) {
    %c0_i32 = arith.constant 0 : i32
    return %arg0, %arg2 : i32, i32
  }
  func.func @transform_1(%arg0: i32, %arg1: i32, %arg2: i32) -> (i32, i32) {
    %c0_i32 = arith.constant 0 : i32
    return %arg2, %arg1 : i32, i32
  }
  func.func @transform_2(%arg0: i32, %arg1: i32, %arg2: i32) -> (i32, i32) {
    %c0_i32 = arith.constant 0 : i32
    %c0_i32_0 = arith.constant 0 : i32
    return %c0_i32, %arg1 : i32, i32
  }
  func.func @transform_3(%arg0: i32, %arg1: i32, %arg2: i32) -> (i32, i32) {
    %c0_i32 = arith.constant 0 : i32
    return %arg0, %arg1 : i32, i32
  }
}

module attributes {stable_mosaic.version = 11 : i64} {
  func.func @_linear_res_ln_kernel(%arg0: i32, %arg1: i32, %arg2: i32, %arg3: memref<16x32xbf16, #tpu.memory_space<vmem>>, %arg4: memref<32x32xbf16, #tpu.memory_space<vmem>>, %arg5: memref<1x32xf32, #tpu.memory_space<vmem>>, %arg6: memref<16x32xbf16, #tpu.memory_space<vmem>>, %arg7: memref<1x32xf32, #tpu.memory_space<vmem>>, %arg8: memref<1x32xf32, #tpu.memory_space<vmem>>, %arg9: memref<16x32xbf16, #tpu.memory_space<vmem>>, %arg10: memref<16x32xf32, #tpu.memory_space<vmem>>) attributes {dimension_semantics = [#tpu.dimension_semantics<parallel>, #tpu.dimension_semantics<parallel>, #tpu.dimension_semantics<arbitrary>], iteration_bounds = array<i64: 1, 1, 1>, scalar_prefetch = 0 : i64, scratch_operands = 1 : i64, tpu.core_type = #tpu.core_type<tc>, window_params = [{transform_indices = @transform_0, window_bounds = array<i64: 16, 32>}, {transform_indices = @transform_1, window_bounds = array<i64: 32, 32>}, {transform_indices = @transform_2, window_bounds = array<i64: 1, 32>}, {transform_indices = @transform_3, window_bounds = array<i64: 16, 32>}, {transform_indices = @transform_4, window_bounds = array<i64: 1, 32>}, {transform_indices = @transform_5, window_bounds = array<i64: 1, 32>}, {transform_indices = @transform_6, window_bounds = array<i64: 16, 32>}]} {
    %c0_i32 = arith.constant 0 : i32
    %0 = arith.cmpi eq, %arg2, %c0_i32 : i32
    %1 = arith.extui %0 : i1 to i32
    %c0_i32_0 = arith.constant 0 : i32
    %2 = arith.cmpi ne, %1, %c0_i32_0 : i32
    scf.if %2 {
      %cst_10 = arith.constant 0.000000e+00 : f32
      %12 = vector.broadcast %cst_10 : f32 to vector<16x32xf32>
      %c0_11 = arith.constant 0 : index
      %c0_12 = arith.constant 0 : index
      %13 = vector.load %arg10[%c0_11, %c0_12] : memref<16x32xf32, #tpu.memory_space<vmem>>, vector<16x32xf32>
      tpu.vector_store %arg10[%c0_11, %c0_12], %12 {strides = array<i32>} : memref<16x32xf32, #tpu.memory_space<vmem>>, vector<16x32xf32>,
    } else {
    }
    %c0 = arith.constant 0 : index
    %c0_1 = arith.constant 0 : index
    %3 = vector.load %arg10[%c0, %c0_1] : memref<16x32xf32, #tpu.memory_space<vmem>>, vector<16x32xf32>
    %c0_2 = arith.constant 0 : index
    %c0_3 = arith.constant 0 : index
    %4 = vector.load %arg3[%c0_2, %c0_3] : memref<16x32xbf16, #tpu.memory_space<vmem>>, vector<16x32xbf16>
    %c0_4 = arith.constant 0 : index
    %c0_5 = arith.constant 0 : index
    %5 = vector.load %arg4[%c0_4, %c0_5] : memref<32x32xbf16, #tpu.memory_space<vmem>>, vector<32x32xbf16>
    %cst = arith.constant dense<0.000000e+00> : vector<16x32xf32>
    %6 = tpu.matmul %4, %5, %cst {dimension_numbers = #tpu.dot_dimension_numbers<[1], [0], [0], [1], [0, 0, 1, 1], [], []>} : vector<16x32xbf16>, vector<32x32xbf16>, vector<16x32xf32> -> vector<16x32xf32>
    %7 = arith.addf %3, %6 : vector<16x32xf32>
    %c0_6 = arith.constant 0 : index
    %c0_7 = arith.constant 0 : index
    %8 = vector.load %arg10[%c0_6, %c0_7] : memref<16x32xf32, #tpu.memory_space<vmem>>, vector<16x32xf32>
    tpu.vector_store %arg10[%c0_6, %c0_7], %7 {strides = array<i32>} : memref<16x32xf32, #tpu.memory_space<vmem>>, vector<16x32xf32>,
    %c0_i32_8 = arith.constant 0 : i32
    %9 = arith.cmpi eq, %arg2, %c0_i32_8 : i32
    %10 = arith.extui %9 : i1 to i32
    %c0_i32_9 = arith.constant 0 : i32
    %11 = arith.cmpi ne, %10, %c0_i32_9 : i32
    scf.if %11 {
      %c0_10 = arith.constant 0 : index
      %c0_11 = arith.constant 0 : index
      %12 = vector.load %arg10[%c0_10, %c0_11] : memref<16x32xf32, #tpu.memory_space<vmem>>, vector<16x32xf32>
      %c0_12 = arith.constant 0 : index
      %c0_13 = arith.constant 0 : index
      %13 = vector.load %arg5[%c0_12, %c0_13] : memref<1x32xf32, #tpu.memory_space<vmem>>, vector<1x32xf32>
      %14 = vector.broadcast %13 : vector<1x32xf32> to vector<16x32xf32>
      %15 = arith.addf %12, %14 : vector<16x32xf32>
      %c0_14 = arith.constant 0 : index
      %c0_15 = arith.constant 0 : index
      %16 = vector.load %arg6[%c0_14, %c0_15] : memref<16x32xbf16, #tpu.memory_space<vmem>>, vector<16x32xbf16>
      %17 = arith.extf %16 : vector<16x32xbf16> to vector<16x32xf32>
      %18 = arith.addf %15, %17 : vector<16x32xf32>
      %cst_16 = arith.constant dense<0.000000e+00> : vector<16xf32>
      %19 = vector.multi_reduction <add>, %18, %cst_16 [1] : vector<16x32xf32> to vector<16xf32>
      %20 = vector.shape_cast %19 : vector<16xf32> to vector<16x1xf32>
      %cst_17 = arith.constant 3.200000e+01 : f32
      %21 = vector.broadcast %cst_17 : f32 to vector<16x1xf32>
      %22 = arith.divf %20, %21 : vector<16x1xf32>
      %23 = vector.broadcast %22 : vector<16x1xf32> to vector<16x32xf32>
      %24 = arith.subf %18, %23 : vector<16x32xf32>
      %25 = arith.mulf %24, %24 : vector<16x32xf32>
      %cst_18 = arith.constant dense<0.000000e+00> : vector<16xf32>
      %26 = vector.multi_reduction <add>, %25, %cst_18 [1] : vector<16x32xf32> to vector<16xf32>
      %27 = vector.shape_cast %26 : vector<16xf32> to vector<16x1xf32>
      %cst_19 = arith.constant 3.200000e+01 : f32
      %28 = vector.broadcast %cst_19 : f32 to vector<16x1xf32>
      %29 = arith.divf %27, %28 : vector<16x1xf32>
      %30 = vector.broadcast %22 : vector<16x1xf32> to vector<16x32xf32>
      %31 = arith.subf %18, %30 : vector<16x32xf32>
      %cst_20 = arith.constant 9.99999996E-13 : f32
      %32 = vector.broadcast %cst_20 : f32 to vector<16x1xf32>
      %33 = arith.addf %29, %32 : vector<16x1xf32>
      %34 = math.rsqrt %33 : vector<16x1xf32>
      %35 = vector.broadcast %34 : vector<16x1xf32> to vector<16x32xf32>
      %36 = arith.mulf %31, %35 : vector<16x32xf32>
      %c0_21 = arith.constant 0 : index
      %c0_22 = arith.constant 0 : index
      %37 = vector.load %arg7[%c0_21, %c0_22] : memref<1x32xf32, #tpu.memory_space<vmem>>, vector<1x32xf32>
      %38 = vector.broadcast %37 : vector<1x32xf32> to vector<16x32xf32>
      %39 = arith.mulf %36, %38 : vector<16x32xf32>
      %c0_23 = arith.constant 0 : index
      %c0_24 = arith.constant 0 : index
      %40 = vector.load %arg8[%c0_23, %c0_24] : memref<1x32xf32, #tpu.memory_space<vmem>>, vector<1x32xf32>
      %41 = vector.broadcast %40 : vector<1x32xf32> to vector<16x32xf32>
      %42 = arith.addf %39, %41 : vector<16x32xf32>
      %43 = arith.truncf %42 : vector<16x32xf32> to vector<16x32xbf16>
      %c0_25 = arith.constant 0 : index
      %c0_26 = arith.constant 0 : index
      %44 = vector.load %arg9[%c0_25, %c0_26] : memref<16x32xbf16, #tpu.memory_space<vmem>>, vector<16x32xbf16>
      tpu.vector_store %arg9[%c0_25, %c0_26], %43 {strides = array<i32>} : memref<16x32xbf16, #tpu.memory_space<vmem>>, vector<16x32xbf16>,
    } else {
    }
    return
  }
  func.func @transform_0(%arg0: i32, %arg1: i32, %arg2: i32) -> (i32, i32) {
    %c0_i32 = arith.constant 0 : i32
    return %arg0, %arg2 : i32, i32
  }
  func.func @transform_1(%arg0: i32, %arg1: i32, %arg2: i32) -> (i32, i32) {
    %c0_i32 = arith.constant 0 : i32
    return %arg2, %arg1 : i32, i32
  }
  func.func @transform_2(%arg0: i32, %arg1: i32, %arg2: i32) -> (i32, i32) {
    %c0_i32 = arith.constant 0 : i32
    %c0_i32_0 = arith.constant 0 : i32
    return %c0_i32, %arg1 : i32, i32
  }
  func.func @transform_3(%arg0: i32, %arg1: i32, %arg2: i32) -> (i32, i32) {
    %c0_i32 = arith.constant 0 : i32
    return %arg0, %arg1 : i32, i32
  }
  func.func @transform_4(%arg0: i32, %arg1: i32, %arg2: i32) -> (i32, i32) {
    %c0_i32 = arith.constant 0 : i32
    %c0_i32_0 = arith.constant 0 : i32
    return %c0_i32, %arg1 : i32, i32
  }
  func.func @transform_5(%arg0: i32, %arg1: i32, %arg2: i32) -> (i32, i32) {
    %c0_i32 = arith.constant 0 : i32
    %c0_i32_0 = arith.constant 0 : i32
    return %c0_i32, %arg1 : i32, i32
  }
  func.func @transform_6(%arg0: i32, %arg1: i32, %arg2: i32) -> (i32, i32) {
    %c0_i32 = arith.constant 0 : i32
    return %arg0, %arg1 : i32, i32
  }
}

module attributes {stable_mosaic.version = 11 : i64} {
  func.func @_linear_res_ln_kernel(%arg0: i32, %arg1: i32, %arg2: i32, %arg3: memref<16x64xbf16, #tpu.memory_space<vmem>>, %arg4: memref<64x32xbf16, #tpu.memory_space<vmem>>, %arg5: memref<1x32xf32, #tpu.memory_space<vmem>>, %arg6: memref<16x32xbf16, #tpu.memory_space<vmem>>, %arg7: memref<1x32xf32, #tpu.memory_space<vmem>>, %arg8: memref<1x32xf32, #tpu.memory_space<vmem>>, %arg9: memref<16x32xbf16, #tpu.memory_space<vmem>>, %arg10: memref<16x32xf32, #tpu.memory_space<vmem>>) attributes {dimension_semantics = [#tpu.dimension_semantics<parallel>, #tpu.dimension_semantics<parallel>, #tpu.dimension_semantics<arbitrary>], iteration_bounds = array<i64: 1, 1, 1>, scalar_prefetch = 0 : i64, scratch_operands = 1 : i64, tpu.core_type = #tpu.core_type<tc>, window_params = [{transform_indices = @transform_0, window_bounds = array<i64: 16, 64>}, {transform_indices = @transform_1, window_bounds = array<i64: 64, 32>}, {transform_indices = @transform_2, window_bounds = array<i64: 1, 32>}, {transform_indices = @transform_3, window_bounds = array<i64: 16, 32>}, {transform_indices = @transform_4, window_bounds = array<i64: 1, 32>}, {transform_indices = @transform_5, window_bounds = array<i64: 1, 32>}, {transform_indices = @transform_6, window_bounds = array<i64: 16, 32>}]} {
    %c0_i32 = arith.constant 0 : i32
    %0 = arith.cmpi eq, %arg2, %c0_i32 : i32
    %1 = arith.extui %0 : i1 to i32
    %c0_i32_0 = arith.constant 0 : i32
    %2 = arith.cmpi ne, %1, %c0_i32_0 : i32
    scf.if %2 {
      %cst_10 = arith.constant 0.000000e+00 : f32
      %12 = vector.broadcast %cst_10 : f32 to vector<16x32xf32>
      %c0_11 = arith.constant 0 : index
      %c0_12 = arith.constant 0 : index
      %13 = vector.load %arg10[%c0_11, %c0_12] : memref<16x32xf32, #tpu.memory_space<vmem>>, vector<16x32xf32>
      tpu.vector_store %arg10[%c0_11, %c0_12], %12 {strides = array<i32>} : memref<16x32xf32, #tpu.memory_space<vmem>>, vector<16x32xf32>,
    } else {
    }
    %c0 = arith.constant 0 : index
    %c0_1 = arith.constant 0 : index
    %3 = vector.load %arg10[%c0, %c0_1] : memref<16x32xf32, #tpu.memory_space<vmem>>, vector<16x32xf32>
    %c0_2 = arith.constant 0 : index
    %c0_3 = arith.constant 0 : index
    %4 = vector.load %arg3[%c0_2, %c0_3] : memref<16x64xbf16, #tpu.memory_space<vmem>>, vector<16x64xbf16>
    %c0_4 = arith.constant 0 : index
    %c0_5 = arith.constant 0 : index
    %5 = vector.load %arg4[%c0_4, %c0_5] : memref<64x32xbf16, #tpu.memory_space<vmem>>, vector<64x32xbf16>
    %cst = arith.constant dense<0.000000e+00> : vector<16x32xf32>
    %6 = tpu.matmul %4, %5, %cst {dimension_numbers = #tpu.dot_dimension_numbers<[1], [0], [0], [1], [0, 0, 1, 1], [], []>} : vector<16x64xbf16>, vector<64x32xbf16>, vector<16x32xf32> -> vector<16x32xf32>
    %7 = arith.addf %3, %6 : vector<16x32xf32>
    %c0_6 = arith.constant 0 : index
    %c0_7 = arith.constant 0 : index
    %8 = vector.load %arg10[%c0_6, %c0_7] : memref<16x32xf32, #tpu.memory_space<vmem>>, vector<16x32xf32>
    tpu.vector_store %arg10[%c0_6, %c0_7], %7 {strides = array<i32>} : memref<16x32xf32, #tpu.memory_space<vmem>>, vector<16x32xf32>,
    %c0_i32_8 = arith.constant 0 : i32
    %9 = arith.cmpi eq, %arg2, %c0_i32_8 : i32
    %10 = arith.extui %9 : i1 to i32
    %c0_i32_9 = arith.constant 0 : i32
    %11 = arith.cmpi ne, %10, %c0_i32_9 : i32
    scf.if %11 {
      %c0_10 = arith.constant 0 : index
      %c0_11 = arith.constant 0 : index
      %12 = vector.load %arg10[%c0_10, %c0_11] : memref<16x32xf32, #tpu.memory_space<vmem>>, vector<16x32xf32>
      %c0_12 = arith.constant 0 : index
      %c0_13 = arith.constant 0 : index
      %13 = vector.load %arg5[%c0_12, %c0_13] : memref<1x32xf32, #tpu.memory_space<vmem>>, vector<1x32xf32>
      %14 = vector.broadcast %13 : vector<1x32xf32> to vector<16x32xf32>
      %15 = arith.addf %12, %14 : vector<16x32xf32>
      %c0_14 = arith.constant 0 : index
      %c0_15 = arith.constant 0 : index
      %16 = vector.load %arg6[%c0_14, %c0_15] : memref<16x32xbf16, #tpu.memory_space<vmem>>, vector<16x32xbf16>
      %17 = arith.extf %16 : vector<16x32xbf16> to vector<16x32xf32>
      %18 = arith.addf %15, %17 : vector<16x32xf32>
      %cst_16 = arith.constant dense<0.000000e+00> : vector<16xf32>
      %19 = vector.multi_reduction <add>, %18, %cst_16 [1] : vector<16x32xf32> to vector<16xf32>
      %20 = vector.shape_cast %19 : vector<16xf32> to vector<16x1xf32>
      %cst_17 = arith.constant 3.200000e+01 : f32
      %21 = vector.broadcast %cst_17 : f32 to vector<16x1xf32>
      %22 = arith.divf %20, %21 : vector<16x1xf32>
      %23 = vector.broadcast %22 : vector<16x1xf32> to vector<16x32xf32>
      %24 = arith.subf %18, %23 : vector<16x32xf32>
      %25 = arith.mulf %24, %24 : vector<16x32xf32>
      %cst_18 = arith.constant dense<0.000000e+00> : vector<16xf32>
      %26 = vector.multi_reduction <add>, %25, %cst_18 [1] : vector<16x32xf32> to vector<16xf32>
      %27 = vector.shape_cast %26 : vector<16xf32> to vector<16x1xf32>
      %cst_19 = arith.constant 3.200000e+01 : f32
      %28 = vector.broadcast %cst_19 : f32 to vector<16x1xf32>
      %29 = arith.divf %27, %28 : vector<16x1xf32>
      %30 = vector.broadcast %22 : vector<16x1xf32> to vector<16x32xf32>
      %31 = arith.subf %18, %30 : vector<16x32xf32>
      %cst_20 = arith.constant 9.99999996E-13 : f32
      %32 = vector.broadcast %cst_20 : f32 to vector<16x1xf32>
      %33 = arith.addf %29, %32 : vector<16x1xf32>
      %34 = math.rsqrt %33 : vector<16x1xf32>
      %35 = vector.broadcast %34 : vector<16x1xf32> to vector<16x32xf32>
      %36 = arith.mulf %31, %35 : vector<16x32xf32>
      %c0_21 = arith.constant 0 : index
      %c0_22 = arith.constant 0 : index
      %37 = vector.load %arg7[%c0_21, %c0_22] : memref<1x32xf32, #tpu.memory_space<vmem>>, vector<1x32xf32>
      %38 = vector.broadcast %37 : vector<1x32xf32> to vector<16x32xf32>
      %39 = arith.mulf %36, %38 : vector<16x32xf32>
      %c0_23 = arith.constant 0 : index
      %c0_24 = arith.constant 0 : index
      %40 = vector.load %arg8[%c0_23, %c0_24] : memref<1x32xf32, #tpu.memory_space<vmem>>, vector<1x32xf32>
      %41 = vector.broadcast %40 : vector<1x32xf32> to vector<16x32xf32>
      %42 = arith.addf %39, %41 : vector<16x32xf32>
      %43 = arith.truncf %42 : vector<16x32xf32> to vector<16x32xbf16>
      %c0_25 = arith.constant 0 : index
      %c0_26 = arith.constant 0 : index
      %44 = vector.load %arg9[%c0_25, %c0_26] : memref<16x32xbf16, #tpu.memory_space<vmem>>, vector<16x32xbf16>
      tpu.vector_store %arg9[%c0_25, %c0_26], %43 {strides = array<i32>} : memref<16x32xbf16, #tpu.memory_space<vmem>>, vector<16x32xbf16>,
    } else {
    }
    return
  }
  func.func @transform_0(%arg0: i32, %arg1: i32, %arg2: i32) -> (i32, i32) {
    %c0_i32 = arith.constant 0 : i32
    return %arg0, %arg2 : i32, i32
  }
  func.func @transform_1(%arg0: i32, %arg1: i32, %arg2: i32) -> (i32, i32) {
    %c0_i32 = arith.constant 0 : i32
    return %arg2, %arg1 : i32, i32
  }
  func.func @transform_2(%arg0: i32, %arg1: i32, %arg2: i32) -> (i32, i32) {
    %c0_i32 = arith.constant 0 : i32
    %c0_i32_0 = arith.constant 0 : i32
    return %c0_i32, %arg1 : i32, i32
  }
  func.func @transform_3(%arg0: i32, %arg1: i32, %arg2: i32) -> (i32, i32) {
    %c0_i32 = arith.constant 0 : i32
    return %arg0, %arg1 : i32, i32
  }
  func.func @transform_4(%arg0: i32, %arg1: i32, %arg2: i32) -> (i32, i32) {
    %c0_i32 = arith.constant 0 : i32
    %c0_i32_0 = arith.constant 0 : i32
    return %c0_i32, %arg1 : i32, i32
  }
  func.func @transform_5(%arg0: i32, %arg1: i32, %arg2: i32) -> (i32, i32) {
    %c0_i32 = arith.constant 0 : i32
    %c0_i32_0 = arith.constant 0 : i32
    return %c0_i32, %arg1 : i32, i32
  }
  func.func @transform_6(%arg0: i32, %arg1: i32, %arg2: i32) -> (i32, i32) {
    %c0_i32 = arith.constant 0 : i32
    return %arg0, %arg1 : i32, i32
  }
}

module attributes {stable_mosaic.version = 11 : i64} {
  func.func @_max_seq_kernel(%arg0: i32, %arg1: memref<1x8x32xbf16, #tpu.memory_space<vmem>>, %arg2: memref<1x1x32xbf16, #tpu.memory_space<vmem>>) attributes {dimension_semantics = [#tpu.dimension_semantics<parallel>], iteration_bounds = array<i64: 2>, scalar_prefetch = 0 : i64, scratch_operands = 0 : i64, tpu.core_type = #tpu.core_type<tc>, window_params = [{transform_indices = @transform_0, window_bounds = array<i64: 1, 8, 32>}, {transform_indices = @transform_1, window_bounds = array<i64: 1, 1, 32>}]} {
    %c0 = arith.constant 0 : index
    %c0_0 = arith.constant 0 : index
    %c0_1 = arith.constant 0 : index
    %0 = vector.load %arg1[%c0, %c0_0, %c0_1] : memref<1x8x32xbf16, #tpu.memory_space<vmem>>, vector<1x8x32xbf16>
    %cst = arith.constant dense<0xFF80> : vector<1x32xbf16>
    %1 = vector.multi_reduction <maximumf>, %0, %cst [1] : vector<1x8x32xbf16> to vector<1x32xbf16>
    %2 = vector.shape_cast %1 : vector<1x32xbf16> to vector<1x1x32xbf16>
    %c0_2 = arith.constant 0 : index
    %c0_3 = arith.constant 0 : index
    %c0_4 = arith.constant 0 : index
    %3 = vector.load %arg2[%c0_2, %c0_3, %c0_4] : memref<1x1x32xbf16, #tpu.memory_space<vmem>>, vector<1x1x32xbf16>
    tpu.vector_store %arg2[%c0_2, %c0_3, %c0_4], %2 {strides = array<i32>} : memref<1x1x32xbf16, #tpu.memory_space<vmem>>, vector<1x1x32xbf16>,
    return
  }
  func.func @transform_0(%arg0: i32) -> (i32, i32, i32) {
    %c0_i32 = arith.constant 0 : i32
    %c0_i32_0 = arith.constant 0 : i32
    %c0_i32_1 = arith.constant 0 : i32
    return %arg0, %c0_i32, %c0_i32_0 : i32, i32, i32
  }
  func.func @transform_1(%arg0: i32) -> (i32, i32, i32) {
    %c0_i32 = arith.constant 0 : i32
    %c0_i32_0 = arith.constant 0 : i32
    %c0_i32_1 = arith.constant 0 : i32
    return %arg0, %c0_i32, %c0_i32_0 : i32, i32, i32
  }
}

module attributes {stable_mosaic.version = 11 : i64} {
  func.func @_linear_kernel(%arg0: i32, %arg1: i32, %arg2: i32, %arg3: memref<2x32xbf16, #tpu.memory_space<vmem>>, %arg4: memref<32x128xbf16, #tpu.memory_space<vmem>>, %arg5: memref<1x128xf32, #tpu.memory_space<vmem>>, %arg6: memref<2x128xf32, #tpu.memory_space<vmem>>, %arg7: memref<2x128xf32, #tpu.memory_space<vmem>>) attributes {dimension_semantics = [#tpu.dimension_semantics<parallel>, #tpu.dimension_semantics<parallel>, #tpu.dimension_semantics<arbitrary>], iteration_bounds = array<i64: 1, 1, 1>, scalar_prefetch = 0 : i64, scratch_operands = 1 : i64, tpu.core_type = #tpu.core_type<tc>, window_params = [{transform_indices = @transform_0, window_bounds = array<i64: 2, 32>}, {transform_indices = @transform_1, window_bounds = array<i64: 32, 128>}, {transform_indices = @transform_2, window_bounds = array<i64: 1, 128>}, {transform_indices = @transform_3, window_bounds = array<i64: 2, 128>}]} {
    %c0_i32 = arith.constant 0 : i32
    %0 = arith.cmpi eq, %arg2, %c0_i32 : i32
    %1 = arith.extui %0 : i1 to i32
    %c0_i32_0 = arith.constant 0 : i32
    %2 = arith.cmpi ne, %1, %c0_i32_0 : i32
    scf.if %2 {
      %cst_10 = arith.constant 0.000000e+00 : f32
      %12 = vector.broadcast %cst_10 : f32 to vector<2x128xf32>
      %c0_11 = arith.constant 0 : index
      %c0_12 = arith.constant 0 : index
      %13 = vector.load %arg7[%c0_11, %c0_12] : memref<2x128xf32, #tpu.memory_space<vmem>>, vector<2x128xf32>
      tpu.vector_store %arg7[%c0_11, %c0_12], %12 {strides = array<i32>} : memref<2x128xf32, #tpu.memory_space<vmem>>, vector<2x128xf32>,
    } else {
    }
    %c0 = arith.constant 0 : index
    %c0_1 = arith.constant 0 : index
    %3 = vector.load %arg7[%c0, %c0_1] : memref<2x128xf32, #tpu.memory_space<vmem>>, vector<2x128xf32>
    %c0_2 = arith.constant 0 : index
    %c0_3 = arith.constant 0 : index
    %4 = vector.load %arg3[%c0_2, %c0_3] : memref<2x32xbf16, #tpu.memory_space<vmem>>, vector<2x32xbf16>
    %c0_4 = arith.constant 0 : index
    %c0_5 = arith.constant 0 : index
    %5 = vector.load %arg4[%c0_4, %c0_5] : memref<32x128xbf16, #tpu.memory_space<vmem>>, vector<32x128xbf16>
    %cst = arith.constant dense<0.000000e+00> : vector<2x128xf32>
    %6 = tpu.matmul %4, %5, %cst {dimension_numbers = #tpu.dot_dimension_numbers<[1], [0], [0], [1], [0, 0, 1, 1], [], []>} : vector<2x32xbf16>, vector<32x128xbf16>, vector<2x128xf32> -> vector<2x128xf32>
    %7 = arith.addf %3, %6 : vector<2x128xf32>
    %c0_6 = arith.constant 0 : index
    %c0_7 = arith.constant 0 : index
    %8 = vector.load %arg7[%c0_6, %c0_7] : memref<2x128xf32, #tpu.memory_space<vmem>>, vector<2x128xf32>
    tpu.vector_store %arg7[%c0_6, %c0_7], %7 {strides = array<i32>} : memref<2x128xf32, #tpu.memory_space<vmem>>, vector<2x128xf32>,
    %c0_i32_8 = arith.constant 0 : i32
    %9 = arith.cmpi eq, %arg2, %c0_i32_8 : i32
    %10 = arith.extui %9 : i1 to i32
    %c0_i32_9 = arith.constant 0 : i32
    %11 = arith.cmpi ne, %10, %c0_i32_9 : i32
    scf.if %11 {
      %c0_10 = arith.constant 0 : index
      %c0_11 = arith.constant 0 : index
      %12 = vector.load %arg7[%c0_10, %c0_11] : memref<2x128xf32, #tpu.memory_space<vmem>>, vector<2x128xf32>
      %c0_12 = arith.constant 0 : index
      %c0_13 = arith.constant 0 : index
      %13 = vector.load %arg5[%c0_12, %c0_13] : memref<1x128xf32, #tpu.memory_space<vmem>>, vector<1x128xf32>
      %14 = vector.broadcast %13 : vector<1x128xf32> to vector<2x128xf32>
      %15 = arith.addf %12, %14 : vector<2x128xf32>
      %c0_14 = arith.constant 0 : index
      %c0_15 = arith.constant 0 : index
      %16 = vector.load %arg6[%c0_14, %c0_15] : memref<2x128xf32, #tpu.memory_space<vmem>>, vector<2x128xf32>
      tpu.vector_store %arg6[%c0_14, %c0_15], %15 {strides = array<i32>} : memref<2x128xf32, #tpu.memory_space<vmem>>, vector<2x128xf32>,
    } else {
    }
    return
  }
  func.func @transform_0(%arg0: i32, %arg1: i32, %arg2: i32) -> (i32, i32) {
    %c0_i32 = arith.constant 0 : i32
    return %arg0, %arg2 : i32, i32
  }
  func.func @transform_1(%arg0: i32, %arg1: i32, %arg2: i32) -> (i32, i32) {
    %c0_i32 = arith.constant 0 : i32
    return %arg2, %arg1 : i32, i32
  }
  func.func @transform_2(%arg0: i32, %arg1: i32, %arg2: i32) -> (i32, i32) {
    %c0_i32 = arith.constant 0 : i32
    %c0_i32_0 = arith.constant 0 : i32
    return %c0_i32, %arg1 : i32, i32
  }
  func.func @transform_3(%arg0: i32, %arg1: i32, %arg2: i32) -> (i32, i32) {
    %c0_i32 = arith.constant 0 : i32
    return %arg0, %arg1 : i32, i32
  }
}

</mosaic_0001>

<bundles_post_ra>
// kernel: transformer_forward.14
= control target key start
LH: loop header
LB: loop body
LE: loop exit
PB: predicated region body
PF: predicated region fallthrough
CT: control target
= control target key end

     0   :  { %vm19_vm0 = vcmask 261120   ;;  %v132_v0 = vmov 0.0   ;;  %vm133_vm1 = vmmov 0   ;;  %vm35_vm2 = vcmask 130048   ;;  %s176_s1 = inlined_call_operand.vmem [shape: bf16[16,32], index: 1, kind: input, shape index: {}]   ;;  %s177_s0 = inlined_call_operand.vmem [shape: f32[16,16], index: 0, kind: input, shape index: {}]   ;;  %s178_s2 = inlined_call_operand.vmem [shape: f32[1,32], index: 2, kind: input, shape index: {}]   ;;  %s179_s3 = inlined_call_operand.vmem [shape: bf16[16,32], index: 3, kind: output, shape index: {}]  }
   0x1   :  { %20 = vst.msk [vmem:[#allocation2] sm:$0xff] %vm19_vm0, %v132_v0  ;;  %21 = vst.msk [vmem:[#allocation2 + $0x8] sm:$0xff] %vm19_vm0, %v132_v0  ;;  %123 = vmatprep.subr.bf16.mxu0 %v132_v0  ;;  %v131_v1 = vld [vmem:[%s176_s1] sm:$0xff]   ;;  %125 = vmatprep.mubr.msk.bf16.mxu0 %vm133_vm1, %v132_v0  ;;  %v25_v3 = vld [vmem:[%s177_s0 + $0x8] sm:$0xff]  ;;  %vm107_vm3 = vcmask 257024  }
   0x2   :  { %v24_v2 = vld [vmem:[%s177_s0] sm:$0xff]  ;;  %124 = vmatpush3.bf16.msra.mxu0 %v131_v1 }
   0x3   :  { %v26_v4 = vpack.c.bf16 %v25_v3, %v24_v2  ;;  %v116_v13 = vld [vmem:[%s178_s2] ss:$0 sm:$0xff] }
   0x5   :  { %126 = vmatmul.mubr.msk.bf16.vlgmr.msra.gmra.mrb[0].mxu0 %vm35_vm2, %v26_v4 }
   0x8   :  { %v22_v5 = vld [vmem:[#allocation2] sm:$0xff]  ;;  %v23_v7 = vld [vmem:[#allocation2 + $0x8] sm:$0xff] }
  0xd8   :  { %v73_v6 = vpop.f32.mrb[0].mxu0 }
  0xd9   :  { %v80_v8 = vadd.f32 %v73_v6, %v22_v5  ;;  %v127_v9 = vpop.f32.mrb[1].mxu0 }
  0xda   :  { %v76_v10 = vpop.f32.mrb[2].mxu0 }
  0xdb   :  { %83 = vst.msk [vmem:[#allocation2] sm:$0xff] %vm19_vm0, %v80_v8  ;;  %v81_v11 = vadd.f32 %v76_v10, %v23_v7  ;;  %v128_v12 = vpop.f32.mrb[3].mxu0 }
  0xdd   :  { %84 = vst.msk [vmem:[#allocation2 + $0x8] sm:$0xff] %vm19_vm0, %v81_v11 }
  0xe2   :  { %v88_v14 = vld [vmem:[#allocation2] sm:$0xff] }
  0xe3   :  { %v97_v15 = vadd.f32 %v116_v13, %v88_v14 }
  0xe4   :  { %v89_v16 = vld [vmem:[#allocation2 + $0x8] sm:$0xff] }
  0xe5   :  { %v119_v17 = vpack.c.bf16 %v97_v15, %v97_v15  ;;  %v98_v18 = vadd.f32 %v116_v13, %v89_v16 }
  0xe7   :  { %108 = vst.msk [vmem:[%s179_s3] sm:$0xf] %vm107_vm3, %v119_v17  ;;  %v120_v19 = vpack.c.bf16 %v98_v18, %v98_v18 }
  0xe9   :  { %109 = vst.msk [vmem:[%s179_s3 + $0x4] sm:$0xf] %vm107_vm3, %v120_v19 }

// kernel: transformer_forward.16
= control target key start
LH: loop header
LB: loop body
LE: loop exit
PB: predicated region body
PF: predicated region fallthrough
CT: control target
= control target key end

     0   :  { %vm19_vm0 = vcmask 785408   ;;  %v151_v0 = vmov 0.0   ;;  %vm152_vm1 = vmmov 0   ;;  %vm47_vm2 = vcmask 261120   ;;  %s195_s1 = inlined_call_operand.vmem [shape: bf16[32,96], index: 1, kind: input, shape index: {}]   ;;  %s196_s0 = inlined_call_operand.vmem [shape: bf16[16,32], index: 0, kind: input, shape index: {}]   ;;  %s197_s2 = inlined_call_operand.vmem [shape: f32[1,96], index: 2, kind: input, shape index: {}]   ;;  %s198_s3 = inlined_call_operand.vmem [shape: bf16[16,96], index: 3, kind: output, shape index: {}]  }
   0x1   :  { %138 = vmatprep.subr.bf16.mxu0 %v151_v0  ;;  %v148_v1 = vld [vmem:[%s195_s1] sm:$0xff]   ;;  %142 = vmatprep.mubr.msk.bf16.mxu0 %vm152_vm1, %v151_v0  ;;  %20 = vst.msk [vmem:[#allocation2] sm:$0xff] %vm19_vm0, %v151_v0  ;;  %21 = vst.msk [vmem:[#allocation2 + $0x8] sm:$0xff] %vm19_vm0, %v151_v0  ;;  %v149_v2 = vld [vmem:[%s195_s1 + $0x8] sm:$0xff]   ;;  %vm119_vm3 = vcmask 781312  }
   0x2   :  { %139 = vmatpush3.bf16.msra.mxu0 %v148_v1  ;;  %v150_v3 = vld [vmem:[%s196_s0] sm:$0xff]  }
   0x3   :  { %140 = vmatprep.subr.bf16.mxu0 %v151_v0  ;;  %v130_v12 = vld [vmem:[%s197_s2] ss:$0 sm:$0xff] }
   0x6   :  { %141 = vmatpush3.bf16.msra.mxu0 %v149_v2 }
   0x8   :  { %v22_v4 = vld [vmem:[#allocation2] sm:$0xff]  ;;  %v23_v6 = vld [vmem:[#allocation2 + $0x8] sm:$0xff] }
   0x9   :  { %143 = vmatmul.mubr.msk.bf16.vlgmr.msra.gmra.mrb[0].mxu0 %vm47_vm2, %v150_v3 }
  0xdc   :  { %v85_v5 = vpop.f32.mrb[0].mxu0 }
  0xdd   :  { %v92_v7 = vadd.f32 %v85_v5, %v22_v4  ;;  %v144_v8 = vpop.f32.mrb[1].mxu0 }
  0xde   :  { %v88_v9 = vpop.f32.mrb[2].mxu0 }
  0xdf   :  { %95 = vst.msk [vmem:[#allocation2] sm:$0xff] %vm19_vm0, %v92_v7  ;;  %v93_v10 = vadd.f32 %v88_v9, %v23_v6  ;;  %v145_v11 = vpop.f32.mrb[3].mxu0 }
  0xe1   :  { %96 = vst.msk [vmem:[#allocation2 + $0x8] sm:$0xff] %vm19_vm0, %v93_v10 }
  0xe6   :  { %v100_v13 = vld [vmem:[#allocation2] sm:$0xff] }
  0xe7   :  { %v109_v14 = vadd.f32 %v130_v12, %v100_v13 }
  0xe8   :  { %v101_v15 = vld [vmem:[#allocation2 + $0x8] sm:$0xff] }
  0xe9   :  { %v133_v16 = vpack.c.bf16 %v109_v14, %v109_v14  ;;  %v110_v17 = vadd.f32 %v130_v12, %v101_v15 }
  0xeb   :  { %120 = vst.msk [vmem:[%s198_s3] sm:$0xf] %vm119_vm3, %v133_v16  ;;  %v134_v18 = vpack.c.bf16 %v110_v17, %v110_v17 }
  0xed   :  { %121 = vst.msk [vmem:[%s198_s3 + $0x4] sm:$0xf] %vm119_vm3, %v134_v18 }

// kernel: transformer_forward.15
= control target key start
LH: loop header
LB: loop body
LE: loop exit
PB: predicated region body
PF: predicated region fallthrough
CT: control target
= control target key end

     0   :  { %s338_s15 = smov 0   ;;  %s364_s0 = inlined_call_operand.vmem [shape: bf16[2,8,32], index: 0, kind: input, shape index: {}]   ;;  %s365_s1 = inlined_call_operand.vmem [shape: f32[8,32], index: 1, kind: input, shape index: {}]   ;;  %s366_s2 = inlined_call_operand.vmem [shape: f32[1,32], index: 2, kind: input, shape index: {}]   ;;  %s367_s3 = inlined_call_operand.vmem [shape: f32[1,32], index: 3, kind: input, shape index: {}]   ;;  %s368_s4 = inlined_call_operand.vmem [shape: bf16[2,8,32], index: 4, kind: output, shape index: {}]  }
   0x1 LB: > { %s284_s16 = sadd.s32 4294967295, %s311_s15   ;;  %p288_p0 = scmp.ge.s32.totalorder %s311_s15, 1  ;;  %s311_s15 = sphi %s338_s15, %s14_s15  }
   0x2   : > { %p161_p1 = scmp.lt.s32.totalorder %s311_s15, 3 }
   0x4   : > { %p162_p2 = pnand %p288_p0, %p161_p1 }
   0x5   : > { %p185_p3 = scmp.lt.s32.totalorder (!%p162_p2), %s284_s16, 1  ;;  %v195_v1 = vld [vmem:[%s365_s1] sm:$0xff] (!%p162_p2)  ;;  %vm197_vm0 = vcmask (!%p162_p2), 261120   ;;  %vm229_vm1 = vcmask (!%p162_p2), 257024  }
   0x6   : > { %165 = sbr.rel (%p162_p2) target bundleno = 337 (0x151), region = 36  ;;  %v291_v14 = vld [vmem:[%s366_s2] ss:$0 sm:$0xff] (!%p162_p2) }
   0x7   : > { %v292_v16 = vld [vmem:[%s367_s3] ss:$0 sm:$0xff] (!%p162_p2) }
   0xd   : > { %s370_s16 = smov (!%p185_p3, %s284_s16), 1 }
   0xe   : > { %s289_s17 = sshll.u32 %s370_s16, 2 }
   0xf   : > { %s188_s20 = scalar_lea.vmem %s364_s0, %s289_s17  ;;  %s192_s29 = scalar_lea.vmem %s368_s4, %s289_s17 }
  0x10   : > { %v193_v0 = vld [vmem:[%s188_s20] sm:$0xf] }
  0x11   : > { %v194_v2 = vunpack.c.l.bf16 %v193_v0 }
  0x13   : > { %v196_v3 = vadd.f32 %v195_v1, %v194_v2 }
  0x15   : > { %v198_v4 = vsel %vm197_vm0, %v196_v3, 0.0 }
  0x16   : > { %199 = vadd.xlane.f32.xlu0 %v198_v4 }
  0xa3   : > { %v200_v5 = vpop.xlane.xlu0 %199 }
  0xa4   : > { %v202_v6 = vmul.f32 0.03125, %v200_v5 }
  0xa6   : > { %v203_v7 = vsub.f32 %v196_v3, %v202_v6 }
  0xa8   : > { %v204_v8 = vmul.f32 %v203_v7, %v203_v7 }
  0xaa   : > { %v205_v9 = vsel %vm197_vm0, %v204_v8, 0.0 }
  0xab   : > { %206 = vadd.xlane.f32.xlu0 %v205_v9 }
 0x138   : > { %v207_v10 = vpop.xlane.xlu0 %206 }
 0x139   : > { %v208_v11 = vmul.f32 0.03125, %v207_v10 }
 0x13b   : > { %v209_v12 = vadd.f32 1e-12, %v208_v11 }
 0x13d   : > { %303 = vrsqrt.f32 %v209_v12 }
 0x147   : > { %v304_v13 = vpop.eup %303 }
 0x148   : > { %v211_v15 = vmul.f32 %v304_v13, %v203_v7 }
 0x14a   : > { %v219_v17 = vmul.f32 %v291_v14, %v211_v15 }
 0x14c   : > { %v227_v18 = vadd.f32 %v292_v16, %v219_v17 }
 0x14e   : > { %v228_v19 = vpack.c.bf16 %v227_v18, %v227_v18 }
 0x150   : > { %230 = vst.msk [vmem:[%s192_s29] sm:$0xf] %vm229_vm1, %v228_v19 }
 0x151 PF: > { %s14_s15 = sadd.s32 1, %s311_s15  }
 0x152   : > { %p11_p4 = scmp.ge.s32.totalorder %s14_s15, 4  }
 0x154   :  { %13 = sbr.rel (!%p11_p4) target bundleno = 1 (0x1), region = 66 }

// kernel: transformer_forward.17
= control target key start
LH: loop header
LB: loop body
LE: loop exit
PB: predicated region body
PF: predicated region fallthrough
CT: control target
= control target key end

     0   :  { %s955_s9 = smov 0   ;;  %s957_s10 = smov 0   ;;  %s1060_s0 = inlined_call_operand.vmem [shape: bf16[2,8,96], index: 0, kind: input, shape index: {}, may-alias: {0,1}]   ;;  %s1061_s1 = inlined_call_operand.vmem [shape: bf16[2,8,96], index: 1, kind: input, shape index: {}, may-alias: {0,1}]   ;;  %s1062_s2 = inlined_call_operand.vmem [shape: bf16[2,8,32], index: 2, kind: output, shape index: {}]  }
   0x1   :  { %s959_s11 = smov 0  }
   0x2 LB: > { %s24_s12 = sadd.s32 1, %s918_s10  ;;  %p756_p0 = scmp.ge.s32.totalorder %s922_s11, 1  ;;  %s922_s11 = sphi %s959_s11, %s12_s11   ;;  %s918_s10 = sphi %s957_s10, %s1064_s10   ;;  %s914_s9 = sphi %s955_s9, %s1063_s9  }
   0x3   : > { %p26_p1 = scmp.ge.s32.totalorder %s24_s12, 2  ;;  %p139_p2 = scmp.lt.s32.totalorder %s922_s11, 3 }
   0x5   : > { %s1066_s12 = smov (%p26_p1, %s24_s12), 0  ;;  %p140_p3 = pnand %p756_p0, %p139_p2 }
   0x6   : > { %p169_p4 = scmp.lt.s32.totalorder (!%p140_p3), %s914_s9, 1  ;;  %v924_v0 = vmov (!%p140_p3), 0.0   ;;  %vm925_vm0 = vmmov (!%p140_p3), 0   ;;  %s926_s17 = smov (!%p140_p3), 96   ;;  %vm195_vm1 = vcmask (!%p140_p3), 64512   ;;  %vm259_vm2 = vcmask (!%p140_p3), 1043456  }
   0x7   : > { %143 = sbr.rel (%p140_p3) target bundleno = 1596 (0x63c), region = 28  ;;  %794 = vmatprep.subr.bf16.mxu0 (!%p140_p3), %v924_v0  ;;  %796 = vmatprep.mubr.msk.bf16.mxu0 (!%p140_p3), %vm925_vm0, %v924_v0  ;;  %s927_s21 = smov (!%p140_p3), 64   ;;  %vm304_vm3 = vcmask (!%p140_p3), 60416   ;;  %vm426_vm4 = vcmask (!%p140_p3), 126016   ;;  %vm545_vm5 = vcmask (!%p140_p3), 191616   ;;  %vm664_vm6 = vcmask (!%p140_p3), 257216  }
   0x8   : > { %800 = vmatprep.subr.bf16.mxu1 (!%p140_p3), %v924_v0  ;;  %802 = vmatprep.mubr.msk.bf16.mxu1 (!%p140_p3), %vm925_vm0, %v924_v0  ;;  %s928_s22 = smov (!%p140_p3), 88   ;;  %s929_s23 = smov (!%p140_p3), 72  }
   0x9   : > { %s930_s24 = smov (!%p140_p3), 120   ;;  %s931_s25 = smov (!%p140_p3), 80  }
   0xa   : > { %s932_s26 = smov (!%p140_p3), 112   ;;  %s933_s27 = smov (!%p140_p3), 104  }
   0xb   : > { %s934_s3 = smov (!%p140_p3), 56   ;;  %s935_s4 = smov (!%p140_p3), 48  }
   0xc   : > { %s936_s5 = smov (!%p140_p3), 40   ;;  %s937_s6 = smov (!%p140_p3), 8  }
   0xd   : > { %s938_s7 = smov (!%p140_p3), 16   ;;  %s939_s8 = smov (!%p140_p3), 24  }
   0xe   : > { %s1068_s9 = smov (!%p169_p4, %s914_s9), 1 }
   0xf   : > { %s979_s13 = sshll.u32 %s1068_s9, 2 }
  0x10   : > { %s179_s16 = scalar_lea.vmem %s1061_s1, %s979_s13  ;;  %s175_s20 = scalar_lea.vmem %s1060_s0, %s979_s13 }
  0x11   : > { %v985_v1 = vld [vmem:[%s179_s16] ss:$0 sps:$4 sm:$0xff]   ;;  %s1024_s30 = scalar_lea.vmem %s1062_s2, %s979_s13 }
  0x12   : > { %193 = vrot.lane.b32.xlu0 %v985_v1, %s926_s17  ;;  %v188_v4 = vld [vmem:[%s175_s20] sm:$0xf]  ;;  %254 = vrot.lane.b32.xlu1 %v985_v1, %s927_s21 }
  0x13   : > { %v763_v17 = vcombine.low %v188_v4, %v188_v4 }
  0x16   : > { %311 = vrot.lane.b32.xlu1 %v985_v1, %s928_s22 }
  0x84   : > { %v194_v2 = vpop.permute.xlu0 %193  ;;  %v255_v10 = vpop.permute.xlu1 %254 }
  0x85   : > { %v200_v3 = vsel %vm195_vm1, %v194_v2, 0  ;;  %v261_v11 = vsel %vm259_vm2, %v255_v10, 0 }
  0x86   : > { %795 = vmatpush3.bf16.xpose.msra.mxu0 %v200_v3  ;;  %801 = vmatpush3.bf16.msra.mxu1 %v261_v11 }
  0x87   : > { %812 = vmatprep.subr.bf16.mxu0 %v924_v0  ;;  %806 = vmatprep.subr.bf16.mxu1 %v924_v0 }
  0x88   : > { %v312_v18 = vpop.permute.xlu1 %311 }
  0x89   : > { %v317_v24 = vsel %vm195_vm1, %v312_v18, 0 }
  0x8d   : > { %797 = vmatmul.mubr.msk.bf16.vlgmr.msra.gmra.mrb[0].mxu0 %vm195_vm1, %v188_v4 }
  0x8e   : > { %814 = vmatprep.mubr.msk.bf16.mxu0 %vm925_vm0, %v924_v0 }
 0x160   : > { %v236_v5 = vpop.f32.mrb[0].mxu0 }
 0x161   : > { %v798_v6 = vpop.f32.mrb[1].mxu0  ;;  %v242_v7 = vsel %vm195_vm1, %v236_v5, -inf }
 0x162   : > { %243 = vmax.xlane.f32.xlu0 %v242_v7  ;;  %v239_v8 = vpop.f32.mrb[2].mxu0 }
 0x163   : > { %v799_v9 = vpop.f32.mrb[3].mxu0 }
 0x178   : > { %549 = vrot.lane.b32.xlu0 %v985_v1, %s929_s23 }
 0x1ef   : > { %v244_v12 = vpop.xlane.xlu0 %243 }
 0x1f0   : > { %v245_v13 = vsub.f32 %v236_v5, %v244_v12 }
 0x1f2   : > { %v246_v14 = vmul.f32 1.442695, %v245_v13 }
 0x1f3   : > { %v550_v27 = vpop.permute.xlu0 %549 }
 0x1f4   : > { %884 = vpow2.f32 %v246_v14  ;;  %v555_v29 = vsel %vm195_vm1, %v550_v27, 0 }
 0x1fe   : > { %v885_v15 = vpop.eup %884 }
 0x1ff   : > { %v248_v16 = vsel %vm195_vm1, %v885_v15, 0.0 }
 0x200   : > { %249 = vadd.xlane.f32.xlu1 %v248_v16 }
 0x211   : > { %309 = vrot.lane.b32.xlu1 %v763_v17, %s930_s24 }
 0x215   : > { %430 = vrot.lane.b32.xlu1 %v985_v1, %s931_s25 }
 0x219   : > { %428 = vrot.lane.b32.xlu1 %v763_v17, %s932_s26 }
 0x21d   : > { %547 = vrot.lane.b32.xlu1 %v763_v17, %s933_s27 }
 0x28d   : > { %v250_v19 = vpop.xlane.xlu1 %249 }
 0x28e   : > { %886 = vrcp.f32 %v250_v19 }
 0x291   : > { %v310_v22 = vpop.permute.xlu1 %309 }
 0x295   : > { %v431_v25 = vpop.permute.xlu1 %430 }
 0x296   : > { %v436_v26 = vsel %vm195_vm1, %v431_v25, 0 }
 0x298   : > { %v887_v20 = vpop.eup %886 }
 0x299   : > { %v252_v21 = vmul.f32 %v887_v20, %v885_v15  ;;  %v429_v28 = vpop.permute.xlu1 %428 }
 0x29b   : > { %v253_v23 = vpack.c.bf16 %v252_v21, %v252_v21 }
 0x29d   : > { %803 = vmatmul.mubr.msk.bf16.vlgmr.msra.gmra.mrb[0].mxu1 %vm195_vm1, %v253_v23  ;;  %v548_v30 = vpop.permute.xlu1 %547 }
 0x29e   : > { %807 = vmatpush3.bf16.xpose.msra.mxu1 %v317_v24  ;;  %808 = vmatprep.mubr.msk.bf16.mxu1 %vm925_vm0, %v924_v0 }
 0x29f   : > { %818 = vmatprep.subr.bf16.mxu1 %v924_v0 }
 0x2a5   : > { %809 = vmatmul.mubr.msk.bf16.vlgmr.msra.gmra.mrb[4].mxu1 %vm195_vm1, %v310_v22 }
 0x2a6   : > { %819 = vmatpush3.bf16.xpose.msra.mxu1 %v436_v26  ;;  %820 = vmatprep.mubr.msk.bf16.mxu1 %vm925_vm0, %v924_v0 }
 0x2a7   : > { %830 = vmatprep.subr.bf16.mxu1 %v924_v0 }
 0x2ad   : > { %821 = vmatmul.mubr.msk.bf16.vlgmr.msra.gmra.mrb[8].mxu1 %vm195_vm1, %v429_v28 }
 0x2ae   : > { %831 = vmatpush3.bf16.xpose.msra.mxu1 %v555_v29  ;;  %832 = vmatprep.mubr.msk.bf16.mxu1 %vm925_vm0, %v924_v0 }
 0x2b5   : > { %833 = vmatmul.mubr.msk.bf16.vlgmr.msra.gmra.mrb[12].mxu1 %vm195_vm1, %v548_v30 }
 0x370   : > { %v297_v31 = vpop.f32.mrb[0].mxu1 }
 0x371   : > { %v303_v32 = vpack.c.bf16 %v297_v31, %v297_v31  ;;  %v804_v33 = vpop.f32.mrb[1].mxu1 }
 0x372   : > { %v300_v34 = vpop.f32.mrb[2].mxu1 }
 0x373   : > { %305 = vst.msk [vmem:[%s1024_s30] sm:$0xf] %vm304_vm3, %v303_v32  ;;  %v805_v35 = vpop.f32.mrb[3].mxu1 }
 0x378   : > { %v353_v36 = vpop.f32.mrb[4].mxu1 }
 0x379   : > { %v810_v37 = vpop.f32.mrb[5].mxu1  ;;  %v359_v38 = vsel %vm195_vm1, %v353_v36, -inf }
 0x37a   : > { %360 = vmax.xlane.f32.xlu1 %v359_v38  ;;  %v356_v39 = vpop.f32.mrb[6].mxu1 }
 0x37b   : > { %v811_v40 = vpop.f32.mrb[7].mxu1 }
 0x380   : > { %v472_v41 = vpop.f32.mrb[8].mxu1 }
 0x381   : > { %v478_v42 = vsel %vm195_vm1, %v472_v41, -inf  ;;  %v822_v43 = vpop.f32.mrb[9].mxu1 }
 0x382   : > { %479 = vmax.xlane.f32.xlu0 %v478_v42  ;;  %v475_v44 = vpop.f32.mrb[10].mxu1 }
 0x383   : > { %v823_v45 = vpop.f32.mrb[11].mxu1 }
 0x388   : > { %v591_v46 = vpop.f32.mrb[12].mxu1 }
 0x389   : > { %v597_v47 = vsel %vm195_vm1, %v591_v46, -inf  ;;  %v834_v48 = vpop.f32.mrb[13].mxu1 }
 0x38a   : > { %598 = vmax.xlane.f32.xlu1 %v597_v47  ;;  %v594_v49 = vpop.f32.mrb[14].mxu1 }
 0x38b   : > { %v835_v50 = vpop.f32.mrb[15].mxu1 }
 0x407   : > { %v361_v51 = vpop.xlane.xlu1 %360 }
 0x408   : > { %v362_v52 = vsub.f32 %v353_v36, %v361_v51 }
 0x40a   : > { %v363_v53 = vmul.f32 1.442695, %v362_v52 }
 0x40c   : > { %888 = vpow2.f32 %v363_v53 }
 0x40f   : > { %v480_v61 = vpop.xlane.xlu0 %479 }
 0x410   : > { %v481_v62 = vsub.f32 %v472_v41, %v480_v61 }
 0x412   : > { %v482_v63 = vmul.f32 1.442695, %v481_v62 }
 0x416   : > { %v889_v54 = vpop.eup %888 }
 0x417   : > { %v599_v55 = vpop.xlane.xlu1 %598  ;;  %v365_v56 = vsel %vm195_vm1, %v889_v54, 0.0 }
 0x418   : > { %v600_v57 = vsub.f32 %v591_v46, %v599_v55  ;;  %366 = vadd.xlane.f32.xlu1 %v365_v56 }
 0x41a   : > { %v601_v58 = vmul.f32 1.442695, %v600_v57 }
 0x41c   : > { %890 = vpow2.f32 %v601_v58 }
 0x41d   : > { %892 = vpow2.f32 %v482_v63 }
 0x426   : > { %v891_v59 = vpop.eup %890 }
 0x427   : > { %v603_v60 = vsel %vm195_vm1, %v891_v59, 0.0  ;;  %v893_v2 = vpop.eup %892 }
 0x428   : > { %604 = vadd.xlane.f32.xlu0 %v603_v60  ;;  %v484_v3 = vsel %vm195_vm1, %v893_v2, 0.0 }
 0x429   : > { %371 = vrot.lane.b32.xlu1 %v985_v1, %s934_s3 }
 0x43e   : > { %490 = vrot.lane.b32.xlu0 %v985_v1, %s935_s4 }
 0x44d   : > { %485 = vadd.xlane.f32.xlu1 %v484_v3 }
 0x45e   : > { %609 = vrot.lane.b32.xlu1 %v985_v1, %s936_s5 }
 0x4a5   : > { %v367_v4 = vpop.xlane.xlu1 %366 }
 0x4a6   : > { %894 = vrcp.f32 %v367_v4 }
 0x4a9   : > { %v372_v5 = vpop.permute.xlu1 %371 }
 0x4aa   : > { %v377_v6 = vsel %vm259_vm2, %v372_v5, 0 }
 0x4ab   : > { %813 = vmatpush3.bf16.msra.mxu0 %v377_v6 }
 0x4ac   : > { %824 = vmatprep.subr.bf16.mxu0 %v924_v0 }
 0x4b0   : > { %v895_v7 = vpop.eup %894 }
 0x4b1   : > { %v369_v8 = vmul.f32 %v895_v7, %v889_v54 }
 0x4b3   : > { %v370_v9 = vpack.c.bf16 %v369_v8, %v369_v8 }
 0x4b5   : > { %815 = vmatmul.mubr.msk.bf16.vlgmr.msra.gmra.mrb[4].mxu0 %vm195_vm1, %v370_v9  ;;  %v605_v10 = vpop.xlane.xlu0 %604 }
 0x4b6   : > { %826 = vmatprep.mubr.msk.bf16.mxu0 %vm925_vm0, %v924_v0 }
 0x4b9   : > { %v491_v11 = vpop.permute.xlu0 %490 }
 0x4ba   : > { %v496_v1 = vsel %vm259_vm2, %v491_v11, 0 }
 0x4bb   : > { %825 = vmatpush3.bf16.msra.mxu0 %v496_v1 }
 0x4bc   : > { %836 = vmatprep.subr.bf16.mxu0 %v924_v0 }
 0x4da   : > { %v486_v12 = vpop.xlane.xlu1 %485 }
 0x4db   : > { %896 = vrcp.f32 %v486_v12 }
 0x4dc   : > { %898 = vrcp.f32 %v605_v10 }
 0x4de   : > { %v610_v14 = vpop.permute.xlu1 %609 }
 0x4df   : > { %v615_v16 = vsel %vm259_vm2, %v610_v14, 0 }
 0x4e5   : > { %v897_v13 = vpop.eup %896 }
 0x4e6   : > { %v488_v15 = vmul.f32 %v897_v13, %v893_v2  ;;  %v899_v18 = vpop.eup %898 }
 0x4e7   : > { %v607_v19 = vmul.f32 %v899_v18, %v891_v59 }
 0x4e8   : > { %v489_v17 = vpack.c.bf16 %v488_v15, %v488_v15 }
 0x4e9   : > { %v608_v20 = vpack.c.bf16 %v607_v19, %v607_v19 }
 0x4ea   : > { %827 = vmatmul.mubr.msk.bf16.vlgmr.msra.gmra.mrb[8].mxu0 %vm195_vm1, %v489_v17 }
 0x4eb   : > { %837 = vmatpush3.bf16.msra.mxu0 %v615_v16  ;;  %838 = vmatprep.mubr.msk.bf16.mxu0 %vm925_vm0, %v924_v0 }
 0x4f2   : > { %839 = vmatmul.mubr.msk.bf16.vlgmr.msra.gmra.mrb[12].mxu0 %vm195_vm1, %v608_v20 }
 0x588   : > { %v413_v21 = vpop.f32.mrb[4].mxu0 }
 0x589   : > { %v775_v22 = vpack.c.bf16 %v413_v21, %v413_v21  ;;  %v816_v23 = vpop.f32.mrb[5].mxu0 }
 0x58a   : > { %v416_v24 = vpop.f32.mrb[6].mxu0 }
 0x58b   : > { %423 = vrot.lane.b32.xlu1 %v775_v22, %s937_s6  ;;  %v817_v25 = vpop.f32.mrb[7].mxu0 }
 0x5bd   : > { %v532_v26 = vpop.f32.mrb[8].mxu0 }
 0x5be   : > { %v776_v27 = vpack.c.bf16 %v532_v26, %v532_v26  ;;  %v828_v28 = vpop.f32.mrb[9].mxu0 }
 0x5bf   : > { %v535_v29 = vpop.f32.mrb[10].mxu0 }
 0x5c0   : > { %542 = vrot.lane.b32.xlu0 %v776_v27, %s938_s7  ;;  %v829_v0 = vpop.f32.mrb[11].mxu0 }
 0x5c5   : > { %v651_v30 = vpop.f32.mrb[12].mxu0 }
 0x5c6   : > { %v777_v31 = vpack.c.bf16 %v651_v30, %v651_v30  ;;  %v840_v32 = vpop.f32.mrb[13].mxu0 }
 0x5c7   : > { %v654_v33 = vpop.f32.mrb[14].mxu0 }
 0x5c8   : > { %661 = vrot.lane.b32.xlu1 %v777_v31, %s939_s8  ;;  %v841_v34 = vpop.f32.mrb[15].mxu0 }
 0x5fd   : > { %v424_v35 = vpop.permute.xlu1 %423 }
 0x5fe   : > { %427 = vst.msk [vmem:[%s1024_s30] sm:$0xf] %vm426_vm4, %v424_v35 }
 0x632   : > { %v543_v36 = vpop.permute.xlu0 %542 }
 0x633   : > { %546 = vst.msk [vmem:[%s1024_s30] sm:$0xf] %vm545_vm5, %v543_v36 }
 0x63a   : > { %v662_v37 = vpop.permute.xlu1 %661 }
 0x63b   : > { %665 = vst.msk [vmem:[%s1024_s30] sm:$0xf] %vm664_vm6, %v662_v37 }
 0x63c PF: > { %s12_s11 = sadd.s32 1, %s922_s11   ;;  %s1063_s9 = smov %s918_s10 }
 0x63d   : > { %p9_p5 = scmp.ge.s32.totalorder %s12_s11, 4   ;;  %s1064_s10 = smov %s1066_s12 }
 0x63f   :  { %11 = sbr.rel (!%p9_p5) target bundleno = 2 (0x2), region = 61 }

// kernel: transformer_forward.19
= control target key start
LH: loop header
LB: loop body
LE: loop exit
PB: predicated region body
PF: predicated region fallthrough
CT: control target
= control target key end

     0   :  { %vm19_vm0 = vcmask 523264   ;;  %v173_v0 = vmov 0.0   ;;  %vm174_vm1 = vmmov 0   ;;  %vm47_vm2 = vcmask 261120   ;;  %s217_s1 = inlined_call_operand.vmem [shape: bf16[32,64], index: 1, kind: input, shape index: {}]   ;;  %s218_s0 = inlined_call_operand.vmem [shape: bf16[16,32], index: 0, kind: input, shape index: {}]   ;;  %s219_s2 = inlined_call_operand.vmem [shape: f32[1,64], index: 2, kind: input, shape index: {}]   ;;  %s220_s3 = inlined_call_operand.vmem [shape: bf16[16,64], index: 3, kind: output, shape index: {}]  }
   0x1   :  { %156 = vmatprep.subr.bf16.mxu0 %v173_v0  ;;  %v166_v1 = vld [vmem:[%s217_s1] sm:$0xff]   ;;  %160 = vmatprep.mubr.msk.bf16.mxu0 %vm174_vm1, %v173_v0  ;;  %20 = vst.msk [vmem:[#allocation2] sm:$0xff] %vm19_vm0, %v173_v0  ;;  %21 = vst.msk [vmem:[#allocation2 + $0x8] sm:$0xff] %vm19_vm0, %v173_v0  ;;  %v167_v2 = vld [vmem:[%s217_s1 + $0x8] sm:$0xff]   ;;  %vm137_vm3 = vcmask 519168  }
   0x2   :  { %157 = vmatpush3.bf16.msra.mxu0 %v166_v1  ;;  %v168_v3 = vld [vmem:[%s218_s0] sm:$0xff]  }
   0x3   :  { %158 = vmatprep.subr.bf16.mxu0 %v173_v0  ;;  %v148_v12 = vld [vmem:[%s219_s2] ss:$0 sm:$0xff] }
   0x6   :  { %159 = vmatpush3.bf16.msra.mxu0 %v167_v2 }
   0x8   :  { %v22_v4 = vld [vmem:[#allocation2] sm:$0xff]  ;;  %v23_v6 = vld [vmem:[#allocation2 + $0x8] sm:$0xff] }
   0x9   :  { %161 = vmatmul.mubr.msk.bf16.vlgmr.msra.gmra.mrb[0].mxu0 %vm47_vm2, %v168_v3 }
  0xdc   :  { %v85_v5 = vpop.f32.mrb[0].mxu0 }
  0xdd   :  { %v92_v7 = vadd.f32 %v85_v5, %v22_v4  ;;  %v162_v8 = vpop.f32.mrb[1].mxu0 }
  0xde   :  { %v88_v9 = vpop.f32.mrb[2].mxu0 }
  0xdf   :  { %95 = vst.msk [vmem:[#allocation2] sm:$0xff] %vm19_vm0, %v92_v7  ;;  %v93_v10 = vadd.f32 %v88_v9, %v23_v6  ;;  %v163_v11 = vpop.f32.mrb[3].mxu0 }
  0xe1   :  { %96 = vst.msk [vmem:[#allocation2 + $0x8] sm:$0xff] %vm19_vm0, %v93_v10 }
  0xe6   :  { %v100_v13 = vld [vmem:[#allocation2] sm:$0xff] }
  0xe7   :  { %v109_v14 = vadd.f32 %v148_v12, %v100_v13 }
  0xe8   :  { %v101_v15 = vld [vmem:[#allocation2 + $0x8] sm:$0xff] }
  0xe9   :  { %v111_v16 = vmul.f32 %v109_v14, %v109_v14  ;;  %v110_v17 = vadd.f32 %v148_v12, %v101_v15 }
  0xeb   :  { %v113_v18 = vmul.f32 %v111_v16, %v109_v14  ;;  %v112_v19 = vmul.f32 %v110_v17, %v110_v17 }
  0xed   :  { %v115_v20 = vmul.f32 0.044715, %v113_v18  ;;  %v114_v21 = vmul.f32 %v112_v19, %v110_v17 }
  0xef   :  { %v117_v22 = vadd.f32 %v115_v20, %v109_v14  ;;  %v116_v23 = vmul.f32 0.044715, %v114_v21 }
  0xf1   :  { %v119_v24 = vmul.f32 0.7978846, %v117_v22  ;;  %v118_v25 = vadd.f32 %v116_v23, %v110_v17 }
  0xf3   :  { %169 = vtanh.f32 %v119_v24  ;;  %v120_v26 = vmul.f32 0.7978846, %v118_v25 }
  0xf5   :  { %171 = vtanh.f32 %v120_v26 }
  0xfd   :  { %v170_v27 = vpop.eup %169 }
  0xfe   :  { %v123_v28 = vadd.f32 1.0, %v170_v27 }
  0xff   :  { %v172_v29 = vpop.eup %171 }
 0x100   :  { %v125_v30 = vmul.f32 0.5, %v123_v28  ;;  %v124_v31 = vadd.f32 1.0, %v172_v29 }
 0x102   :  { %v127_v32 = vmul.f32 %v125_v30, %v109_v14  ;;  %v126_v33 = vmul.f32 0.5, %v124_v31 }
 0x104   :  { %v151_v34 = vpack.c.bf16 %v127_v32, %v127_v32  ;;  %v128_v35 = vmul.f32 %v126_v33, %v110_v17 }
 0x106   :  { %138 = vst.msk [vmem:[%s220_s3] sm:$0xf] %vm137_vm3, %v151_v34  ;;  %v152_v36 = vpack.c.bf16 %v128_v35, %v128_v35 }
 0x108   :  { %139 = vst.msk [vmem:[%s220_s3 + $0x4] sm:$0xf] %vm137_vm3, %v152_v36 }

// kernel: transformer_forward.26
= control target key start
LH: loop header
LB: loop body
LE: loop exit
PB: predicated region body
PF: predicated region fallthrough
CT: control target
= control target key end

     0   :  { %s214_s6 = smov 0   ;;  %s231_s0 = inlined_call_operand.vmem [shape: bf16[2,8,32], index: 0, kind: input, shape index: {}]   ;;  %s232_s1 = inlined_call_operand.vmem [shape: bf16[2,1,32], index: 1, kind: output, shape index: {}]  }
   0x1 LB: > { %s180_s7 = sadd.s32 4294967295, %s202_s6   ;;  %p184_p0 = scmp.ge.s32.totalorder %s202_s6, 1  ;;  %s202_s6 = sphi %s214_s6, %s11_s6  }
   0x2   : > { %p86_p1 = scmp.lt.s32.totalorder %s202_s6, 3 }
   0x4   : > { %p87_p2 = pnand %p184_p0, %p86_p1 }
   0x5   : > { %p103_p3 = scmp.lt.s32.totalorder (!%p87_p2), %s180_s7, 1  ;;  %vm112_vm0 = vcmask (!%p87_p2), 257024   ;;  %vm127_vm1 = vcmask (!%p87_p2), 253952   ;;  %vm128_vm2 = vsmask.f32 (!%p87_p2), 256 }
   0x6   : > { %90 = sbr.rel (%p87_p2) target bundleno = 38 (0x26), region = 24  ;;  %vm129_vm3 = vmand (!%p87_p2), %vm127_vm1, %vm128_vm2 }
   0xd   : > { %s234_s7 = smov (!%p103_p3, %s180_s7), 1 }
   0xe   : > { %s185_s8 = sshll.u32 %s234_s7, 2  ;;  %s109_s14 = scalar_lea.vmem %s232_s1, %s234_s7 }
   0xf   : > { %s106_s11 = scalar_lea.vmem %s231_s0, %s185_s8  ;;  %v130_v11 = vld [vmem:[%s109_s14] sm:$0x1] }
  0x10   : > { %v111_v0 = vld [vmem:[%s106_s11] sm:$0xf] }
  0x11   : > { %v115_v1 = vsel %vm112_vm0, %v111_v0, 4286644096 }
  0x12   : > { %v117_v2 = vunpack.i.l.bf16 %v115_v1  ;;  %v118_v3 = vunpack.i.h.bf16 %v115_v1 }
  0x14   : > { %v119_v4 = vmax.f32 %v117_v2, %v118_v3 }
  0x16   : > { %v120_v5 = vrot.slane %v119_v4, 4 }
  0x18   : > { %v121_v6 = vmax.f32 %v119_v4, %v120_v5 }
  0x1a   : > { %v122_v7 = vrot.slane %v121_v6, 2 }
  0x1c   : > { %v123_v8 = vmax.f32 %v121_v6, %v122_v7 }
  0x1e   : > { %v124_v9 = vrot.slane %v123_v8, 1 }
  0x20   : > { %v125_v10 = vmax.f32 %v123_v8, %v124_v9 }
  0x22   : > { %v126_v12 = vpack.i.bf16 %v125_v10, %v125_v10 }
  0x24   : > { %v131_v13 = vsel %vm129_vm3, %v126_v12, %v130_v11 }
  0x25   : > { %132 = vst [vmem:[%s109_s14] sm:$0x1] %v131_v13 }
  0x26 PF: > { %s11_s6 = sadd.s32 1, %s202_s6  }
  0x27   : > { %p8_p4 = scmp.ge.s32.totalorder %s11_s6, 4  }
  0x29   :  { %10 = sbr.rel (!%p8_p4) target bundleno = 1 (0x1), region = 54 }

// kernel: transformer_forward.20
= control target key start
LH: loop header
LB: loop body
LE: loop exit
PB: predicated region body
PF: predicated region fallthrough
CT: control target
= control target key end

     0   :  { %vm28_vm0 = vcmask 261120   ;;  %v247_v0 = vmov 0.0   ;;  %vm248_vm1 = vmmov 0   ;;  %vm72_vm2 = vcmask 523264   ;;  %s325_s1 = inlined_call_operand.vmem [shape: bf16[64,32], index: 1, kind: input, shape index: {}]   ;;  %s326_s0 = inlined_call_operand.vmem [shape: bf16[16,64], index: 0, kind: input, shape index: {}]   ;;  %s327_s3 = inlined_call_operand.vmem [shape: bf16[16,32], index: 3, kind: input, shape index: {}]   ;;  %s328_s2 = inlined_call_operand.vmem [shape: f32[1,32], index: 2, kind: input, shape index: {}]   ;;  %s329_s4 = inlined_call_operand.vmem [shape: f32[1,32], index: 4, kind: input, shape index: {}]   ;;  %s330_s5 = inlined_call_operand.vmem [shape: f32[1,32], index: 5, kind: input, shape index: {}]   ;;  %s331_s6 = inlined_call_operand.vmem [shape: bf16[16,32], index: 6, kind: output, shape index: {}]  }
   0x1   :  { %224 = vmatprep.subr.bf16.mxu0 %v247_v0  ;;  %v238_v1 = vld [vmem:[%s325_s1] sm:$0xff]   ;;  %232 = vmatprep.mubr.msk.bf16.mxu0 %vm248_vm1, %v247_v0  ;;  %29 = vst.msk [vmem:[#allocation2] sm:$0xff] %vm28_vm0, %v247_v0  ;;  %30 = vst.msk [vmem:[#allocation2 + $0x8] sm:$0xff] %vm28_vm0, %v247_v0  ;;  %v239_v2 = vld [vmem:[%s325_s1 + $0x8] sm:$0xff]   ;;  %vm195_vm3 = vcmask 257024  }
   0x2   :  { %225 = vmatpush3.bf16.msra.mxu0 %v238_v1  ;;  %v240_v3 = vld [vmem:[%s325_s1 + $0x10] sm:$0xff]   ;;  %v241_v4 = vld [vmem:[%s325_s1 + $0x18] sm:$0xff]   ;;  %v242_v5 = vld [vmem:[%s326_s0] sm:$0xff]  }
   0x3   :  { %226 = vmatprep.subr.bf16.mxu0 %v247_v0  ;;  %v216_v14 = vld [vmem:[%s327_s3] sm:$0xff]  }
   0x4   :  { %v208_v15 = vld [vmem:[%s328_s2] ss:$0 sm:$0xff]  ;;  %v217_v16 = vunpack.c.l.bf16 %v216_v14  ;;  %v218_v19 = vunpack.c.h.bf16 %v216_v14 }
   0x5   :  { %v209_v43 = vld [vmem:[%s329_s4] ss:$0 sm:$0xff] }
   0x6   :  { %227 = vmatpush3.bf16.msra.mxu0 %v239_v2  ;;  %v210_v45 = vld [vmem:[%s330_s5] ss:$0 sm:$0xff] }
   0x7   :  { %228 = vmatprep.subr.bf16.mxu0 %v247_v0 }
   0x8   :  { %v31_v6 = vld [vmem:[#allocation2] sm:$0xff]  ;;  %v32_v8 = vld [vmem:[#allocation2 + $0x8] sm:$0xff] }
   0xa   :  { %229 = vmatpush3.bf16.msra.mxu0 %v240_v3 }
   0xb   :  { %230 = vmatprep.subr.bf16.mxu0 %v247_v0 }
   0xe   :  { %231 = vmatpush3.bf16.msra.mxu0 %v241_v4 }
  0x11   :  { %233 = vmatmul.mubr.msk.bf16.vlgmr.msra.gmra.mrb[0].mxu0 %vm72_vm2, %v242_v5 }
  0xe4   :  { %v110_v7 = vpop.f32.mrb[0].mxu0 }
  0xe5   :  { %v117_v9 = vadd.f32 %v110_v7, %v31_v6  ;;  %v234_v10 = vpop.f32.mrb[1].mxu0 }
  0xe6   :  { %v113_v11 = vpop.f32.mrb[2].mxu0 }
  0xe7   :  { %120 = vst.msk [vmem:[#allocation2] sm:$0xff] %vm28_vm0, %v117_v9  ;;  %v118_v12 = vadd.f32 %v113_v11, %v32_v8  ;;  %v235_v13 = vpop.f32.mrb[3].mxu0 }
  0xe9   :  { %121 = vst.msk [vmem:[#allocation2 + $0x8] sm:$0xff] %vm28_vm0, %v118_v12 }
  0xee   :  { %v125_v17 = vld [vmem:[#allocation2] sm:$0xff] }
  0xef   :  { %v134_v18 = vadd.f32 %v208_v15, %v125_v17 }
  0xf0   :  { %v126_v20 = vld [vmem:[#allocation2 + $0x8] sm:$0xff] }
  0xf1   :  { %v140_v21 = vadd.f32 %v217_v16, %v134_v18  ;;  %v135_v22 = vadd.f32 %v208_v15, %v126_v20 }
  0xf3   :  { %v142_v23 = vsel %vm28_vm0, %v140_v21, 0.0  ;;  %v141_v24 = vadd.f32 %v218_v19, %v135_v22 }
  0xf4   :  { %143 = vadd.xlane.f32.xlu0 %v142_v23 }
  0xf5   :  { %v145_v25 = vsel %vm28_vm0, %v141_v24, 0.0 }
  0xf8   :  { %146 = vadd.xlane.f32.xlu0 %v145_v25 }
 0x181   :  { %v144_v26 = vpop.xlane.xlu0 %143 }
 0x182   :  { %v149_v27 = vmul.f32 0.03125, %v144_v26 }
 0x184   :  { %v151_v28 = vsub.f32 %v140_v21, %v149_v27 }
 0x185   :  { %v147_v29 = vpop.xlane.xlu0 %146 }
 0x186   :  { %v150_v30 = vmul.f32 0.03125, %v147_v29  ;;  %v153_v31 = vmul.f32 %v151_v28, %v151_v28 }
 0x188   :  { %v152_v32 = vsub.f32 %v141_v24, %v150_v30  ;;  %v155_v33 = vsel %vm28_vm0, %v153_v31, 0.0 }
 0x189   :  { %156 = vadd.xlane.f32.xlu1 %v155_v33 }
 0x18a   :  { %v154_v34 = vmul.f32 %v152_v32, %v152_v32 }
 0x18c   :  { %v158_v35 = vsel %vm28_vm0, %v154_v34, 0.0 }
 0x18d   :  { %159 = vadd.xlane.f32.xlu1 %v158_v35 }
 0x216   :  { %v157_v36 = vpop.xlane.xlu1 %156 }
 0x217   :  { %v161_v37 = vmul.f32 0.03125, %v157_v36 }
 0x219   :  { %v163_v38 = vadd.f32 1e-12, %v161_v37 }
 0x21a   :  { %v160_v39 = vpop.xlane.xlu1 %159 }
 0x21b   :  { %243 = vrsqrt.f32 %v163_v38  ;;  %v162_v40 = vmul.f32 0.03125, %v160_v39 }
 0x21d   :  { %v164_v41 = vadd.f32 1e-12, %v162_v40 }
 0x21f   :  { %245 = vrsqrt.f32 %v164_v41 }
 0x225   :  { %v244_v42 = vpop.eup %243 }
 0x226   :  { %v167_v44 = vmul.f32 %v244_v42, %v151_v28 }
 0x228   :  { %v176_v46 = vmul.f32 %v209_v43, %v167_v44 }
 0x229   :  { %v246_v47 = vpop.eup %245 }
 0x22a   :  { %v185_v48 = vadd.f32 %v210_v45, %v176_v46  ;;  %v168_v49 = vmul.f32 %v246_v47, %v152_v32 }
 0x22c   :  { %v213_v50 = vpack.c.bf16 %v185_v48, %v185_v48  ;;  %v177_v51 = vmul.f32 %v209_v43, %v168_v49 }
 0x22e   :  { %196 = vst.msk [vmem:[%s331_s6] sm:$0xf] %vm195_vm3, %v213_v50  ;;  %v186_v52 = vadd.f32 %v210_v45, %v177_v51 }
 0x230   :  { %v214_v53 = vpack.c.bf16 %v186_v52, %v186_v52 }
 0x232   :  { %197 = vst.msk [vmem:[%s331_s6 + $0x4] sm:$0xf] %vm195_vm3, %v214_v53 }

// kernel: transformer_forward.18
= control target key start
LH: loop header
LB: loop body
LE: loop exit
PB: predicated region body
PF: predicated region fallthrough
CT: control target
= control target key end

     0   :  { %vm28_vm0 = vcmask 261120   ;;  %v220_v0 = vmov 0.0   ;;  %vm221_vm1 = vmmov 0   ;;  %vm178_vm2 = vcmask 257024   ;;  %s293_s1 = inlined_call_operand.vmem [shape: bf16[32,32], index: 1, kind: input, shape index: {}]   ;;  %s294_s0 = inlined_call_operand.vmem [shape: bf16[16,32], index: 0, kind: input, shape index: {}]   ;;  %s295_s3 = inlined_call_operand.vmem [shape: bf16[16,32], index: 3, kind: input, shape index: {}]   ;;  %s296_s2 = inlined_call_operand.vmem [shape: f32[1,32], index: 2, kind: input, shape index: {}]   ;;  %s297_s4 = inlined_call_operand.vmem [shape: f32[1,32], index: 4, kind: input, shape index: {}]   ;;  %s298_s5 = inlined_call_operand.vmem [shape: f32[1,32], index: 5, kind: input, shape index: {}]   ;;  %s299_s6 = inlined_call_operand.vmem [shape: bf16[16,32], index: 6, kind: output, shape index: {}]  }
   0x1   :  { %203 = vmatprep.subr.bf16.mxu0 %v220_v0  ;;  %v213_v1 = vld [vmem:[%s293_s1] sm:$0xff]   ;;  %207 = vmatprep.mubr.msk.bf16.mxu0 %vm221_vm1, %v220_v0  ;;  %29 = vst.msk [vmem:[#allocation2] sm:$0xff] %vm28_vm0, %v220_v0  ;;  %30 = vst.msk [vmem:[#allocation2 + $0x8] sm:$0xff] %vm28_vm0, %v220_v0  ;;  %v214_v2 = vld [vmem:[%s293_s1 + $0x8] sm:$0xff]  }
   0x2   :  { %204 = vmatpush3.bf16.msra.mxu0 %v213_v1  ;;  %v215_v3 = vld [vmem:[%s294_s0] sm:$0xff]  }
   0x3   :  { %205 = vmatprep.subr.bf16.mxu0 %v220_v0  ;;  %v197_v12 = vld [vmem:[%s295_s3] sm:$0xff]  }
   0x4   :  { %v189_v13 = vld [vmem:[%s296_s2] ss:$0 sm:$0xff]  ;;  %v198_v14 = vunpack.c.l.bf16 %v197_v12  ;;  %v199_v17 = vunpack.c.h.bf16 %v197_v12 }
   0x5   :  { %v190_v41 = vld [vmem:[%s297_s4] ss:$0 sm:$0xff] }
   0x6   :  { %206 = vmatpush3.bf16.msra.mxu0 %v214_v2  ;;  %v191_v43 = vld [vmem:[%s298_s5] ss:$0 sm:$0xff] }
   0x8   :  { %v31_v4 = vld [vmem:[#allocation2] sm:$0xff]  ;;  %v32_v6 = vld [vmem:[#allocation2 + $0x8] sm:$0xff] }
   0x9   :  { %208 = vmatmul.mubr.msk.bf16.vlgmr.msra.gmra.mrb[0].mxu0 %vm28_vm0, %v215_v3 }
  0xdc   :  { %v94_v5 = vpop.f32.mrb[0].mxu0 }
  0xdd   :  { %v101_v7 = vadd.f32 %v94_v5, %v31_v4  ;;  %v209_v8 = vpop.f32.mrb[1].mxu0 }
  0xde   :  { %v97_v9 = vpop.f32.mrb[2].mxu0 }
  0xdf   :  { %103 = vst.msk [vmem:[#allocation2] sm:$0xff] %vm28_vm0, %v101_v7  ;;  %v102_v10 = vadd.f32 %v97_v9, %v32_v6  ;;  %v210_v11 = vpop.f32.mrb[3].mxu0 }
  0xe1   :  { %104 = vst.msk [vmem:[#allocation2 + $0x8] sm:$0xff] %vm28_vm0, %v102_v10 }
  0xe6   :  { %v108_v15 = vld [vmem:[#allocation2] sm:$0xff] }
  0xe7   :  { %v117_v16 = vadd.f32 %v189_v13, %v108_v15 }
  0xe8   :  { %v109_v18 = vld [vmem:[#allocation2 + $0x8] sm:$0xff] }
  0xe9   :  { %v123_v19 = vadd.f32 %v198_v14, %v117_v16  ;;  %v118_v20 = vadd.f32 %v189_v13, %v109_v18 }
  0xeb   :  { %v125_v21 = vsel %vm28_vm0, %v123_v19, 0.0  ;;  %v124_v22 = vadd.f32 %v199_v17, %v118_v20 }
  0xec   :  { %126 = vadd.xlane.f32.xlu0 %v125_v21 }
  0xed   :  { %v128_v23 = vsel %vm28_vm0, %v124_v22, 0.0 }
  0xf0   :  { %129 = vadd.xlane.f32.xlu0 %v128_v23 }
 0x179   :  { %v127_v24 = vpop.xlane.xlu0 %126 }
 0x17a   :  { %v132_v25 = vmul.f32 0.03125, %v127_v24 }
 0x17c   :  { %v134_v26 = vsub.f32 %v123_v19, %v132_v25 }
 0x17d   :  { %v130_v27 = vpop.xlane.xlu0 %129 }
 0x17e   :  { %v133_v28 = vmul.f32 0.03125, %v130_v27  ;;  %v136_v29 = vmul.f32 %v134_v26, %v134_v26 }
 0x180   :  { %v135_v30 = vsub.f32 %v124_v22, %v133_v28  ;;  %v138_v31 = vsel %vm28_vm0, %v136_v29, 0.0 }
 0x181   :  { %139 = vadd.xlane.f32.xlu1 %v138_v31 }
 0x182   :  { %v137_v32 = vmul.f32 %v135_v30, %v135_v30 }
 0x184   :  { %v141_v33 = vsel %vm28_vm0, %v137_v32, 0.0 }
 0x185   :  { %142 = vadd.xlane.f32.xlu1 %v141_v33 }
 0x20e   :  { %v140_v34 = vpop.xlane.xlu1 %139 }
 0x20f   :  { %v144_v35 = vmul.f32 0.03125, %v140_v34 }
 0x211   :  { %v146_v36 = vadd.f32 1e-12, %v144_v35 }
 0x212   :  { %v143_v37 = vpop.xlane.xlu1 %142 }
 0x213   :  { %216 = vrsqrt.f32 %v146_v36  ;;  %v145_v38 = vmul.f32 0.03125, %v143_v37 }
 0x215   :  { %v147_v39 = vadd.f32 1e-12, %v145_v38 }
 0x217   :  { %218 = vrsqrt.f32 %v147_v39 }
 0x21d   :  { %v217_v40 = vpop.eup %216 }
 0x21e   :  { %v150_v42 = vmul.f32 %v217_v40, %v134_v26 }
 0x220   :  { %v159_v44 = vmul.f32 %v190_v41, %v150_v42 }
 0x221   :  { %v219_v45 = vpop.eup %218 }
 0x222   :  { %v168_v46 = vadd.f32 %v191_v43, %v159_v44  ;;  %v151_v47 = vmul.f32 %v219_v45, %v135_v30 }
 0x224   :  { %v194_v48 = vpack.c.bf16 %v168_v46, %v168_v46  ;;  %v160_v49 = vmul.f32 %v190_v41, %v151_v47 }
 0x226   :  { %179 = vst.msk [vmem:[%s299_s6] sm:$0xf] %vm178_vm2, %v194_v48  ;;  %v169_v50 = vadd.f32 %v191_v43, %v160_v49 }
 0x228   :  { %v195_v51 = vpack.c.bf16 %v169_v50, %v169_v50 }
 0x22a   :  { %180 = vst.msk [vmem:[%s299_s6 + $0x4] sm:$0xf] %vm178_vm2, %v195_v51 }

// kernel: transformer_forward.27
= control target key start
LH: loop header
LB: loop body
LE: loop exit
PB: predicated region body
PF: predicated region fallthrough
CT: control target
= control target key end

     0   :  { %v156_v1 = vmov 0.0   ;;  %vm157_vm0 = vmmov 0   ;;  %s203_s0 = inlined_call_operand.vmem [shape: bf16[2,32], index: 0, kind: input, shape index: {}]   ;;  %s204_s1 = inlined_call_operand.vmem [shape: bf16[32,128], index: 1, kind: input, shape index: {}]   ;;  %s205_s2 = inlined_call_operand.vmem [shape: f32[1,128], index: 2, kind: input, shape index: {}]   ;;  %s206_s3 = inlined_call_operand.hbm [shape: f32[2,128], index: 3, kind: output, shape index: {}]  }
   0x1   :  { %v130_v0 = vld [vmem:[%s204_s1] sm:$0xff]   ;;  %119 = vmatprep.subr.bf16.mxu0 %v156_v1  ;;  %20 = vst [vmem:[#allocation2] sm:$0x3] %v156_v1  ;;  %v131_v2 = vld [vmem:[%s204_s1 + $0x8] sm:$0xff]   ;;  %123 = vmatprep.mubr.msk.bf16.mxu0 %vm157_vm0, %v156_v1 }
   0x2   :  { %120 = vmatpush3.bf16.msra.mxu0 %v130_v0 }
   0x3   :  { %8 = vsyncpa [#allocation4], 0  ;;  %121 = vmatprep.subr.bf16.mxu0 %v156_v1  ;;  %v22_v3 = vld [vmem:[%s203_s0] sm:$0x1]  ;;  %vm39_vm1 = vcmask 261120   ;;  %s158_s19 = smov [#allocation3]  }
   0x4   :  { %v115_v10 = vld [vmem:[%s205_s2] ss:$0 sm:$0xff]  ;;  %s104_s20 = sshll.u32 %s158_s19, 4  ;;  %s105_s20 = int_to_ptr.vmem [resolvable:$true] %s104_s20 }
   0x5   :  { %s132_s0 = scalar_lea.vmem %s105_s20, 32  ;;  %p137_p1 = scmp.lt.s32.totalorder %s105_s20, %s105_s20 }
   0x6   :  { %122 = vmatpush3.bf16.msra.mxu0 %v131_v2  ;;  %p133_p0 = scmp.ne.s32.totalorder %s105_s20, %s132_s0  ;;  %p138_p2 = scmp.lt.s32.totalorder %s132_s0, %s132_s0 }
   0x8   :  { %v21_v4 = vld [vmem:[#allocation2] sm:$0x3]  ;;  %p139_p3 = por %p138_p2, %p137_p1 }
   0x9   :  { %124 = vmatmul.mubr.msk.bf16.vlgmr.msra.gmra.mrb[0].mxu0 %vm39_vm1, %v22_v3 }
   0xa   :  { %p140_p4 = pnand %p139_p3, %p133_p0 }
  0xdc   :  { %v77_v5 = vpop.f32.mrb[0].mxu0 }
  0xdd   :  { %v83_v6 = vadd.f32 %v77_v5, %v21_v4  ;;  %v125_v7 = vpop.f32.mrb[1].mxu0 }
  0xde   :  { %v80_v8 = vpop.f32.mrb[2].mxu0 }
  0xdf   :  { %84 = vst [vmem:[#allocation2] sm:$0x3] %v83_v6  ;;  %v126_v9 = vpop.f32.mrb[3].mxu0 }
  0xe6   :  { %v88_v11 = vld [vmem:[#allocation2] sm:$0x3] }
  0xe7   :  { %v96_v12 = vadd.f32 %v115_v10, %v88_v11 }
  0xe9   :  { %97 = vst [vmem:[#allocation3] sm:$0x3] %v96_v12 }
  0xea   :  { %143 = shalt.err (!%p140_p4)
}
  0xeb   :  { %s144_s23 = scalar_lea.hbm %s206_s3, 32 }
  0xec   :  { %p145_p5 = scmp.ne.s32.totalorder %s206_s3, %s144_s23  ;;  %p148_p6 = scmp.lt.u32.totalorder %s144_s23, %s206_s3 }
  0xee   :  { %p150_p7 = pnand %p148_p6, %p145_p5 }
  0xf0   :  { %153 = shalt.err (!%p150_p7)
}
  0xf1   :  { %107 = dma.vmem_to_hbm [thread:$0]  %s105_s20, 32, %s206_s3, [#allocation4]  }
  0xf2   :  { %154 = dma.done.wait [#allocation4], 32  }
  0xf3   :  { %155 = vsyncadd [#allocation4], 4294967264 }
  0xf4   :  { %111 = vsyncpa [#allocation4], 1 }

</bundles_post_ra>
